<compile_context>
chip_gen: v7x
topology: tpu7x:2x2x1
jax: 0.10.0
libtpu: 0.0.40
codegen_flags: <defaults>
</compile_context>

<pallas_src>
import functools

import jax
import jax.numpy as jnp
from jax import lax
from jax.experimental import pallas as pl
from jax.experimental.pallas import tpu as pltpu


# ---------------------------------------------------------------------------
# Wrapper-side (batch-invariant) precompute helpers — plain JAX glue.
# ---------------------------------------------------------------------------
def _spatial_band(sa_w, N):
    """Conv1d(2, 1, 7, padding=3, bias=False) as a stacked (2N, N) band matrix.

    out[n] = sum_c sum_m x[c, m] * band_c[m, n],  band_c[m, n] = w[c, m - n + 3]
    so that [avg_s | max_s] (1, 2N) @ band (2N, N) is the zero-padded conv.
    """
    m = jnp.arange(N)[:, None]
    n = jnp.arange(N)[None, :]
    off = m - n + 3
    valid = (off >= 0) & (off < 7)
    offc = jnp.clip(off, 0, 6)
    band0 = jnp.where(valid, sa_w[0][offc], 0.0)
    band1 = jnp.where(valid, sa_w[1][offc], 0.0)
    return jnp.concatenate([band0, band1], axis=0).astype(jnp.float32)


def _conc_perm(N, F):
    """Permutation P with  reshape((N,F) -> (F,N)) == P @ vstack_q x[:, qN:(q+1)N]."""
    k1 = F // N
    c = jnp.arange(F)
    src = N * (c % k1) + c // k1
    return jax.nn.one_hot(src, F, dtype=jnp.float32)          # (F, F)


def _chunk_perm(N, H):
    """Selector G so torch.chunk + row-major reshape of the (2H, N) attention
    output into the two (N, H) gates is lane-concat of sublane slices of G@att."""
    k2 = H // N
    m = jnp.arange(N)
    blocks = []
    for half in range(2):            # r then u
        for p in range(k2):
            src = half * H + k2 * m + p
            blocks.append(jax.nn.one_hot(src, 2 * H, dtype=jnp.float32))
    return jnp.concatenate(blocks, axis=0)                    # (2H, 2H)


# ---------------------------------------------------------------------------
# Fused TGCN cell kernel (one batch element per grid step).
# ---------------------------------------------------------------------------
def _make_cell_kernel(N, H):
    k1 = (2 * H) // N
    k2 = H // N

    def kernel(xt_ref, hid_ref, windmap_ref,
               ab1_ref, w2t1_ref, b21_ref, w1t1_ref, b11_ref,
               ab2_ref, w2t2_ref, b22_ref, w1t2_ref, b12_ref,
               caw1_ref, caw2_ref, saband_ref, pconc_ref, gall_ref,
               out_ref):
        xt = xt_ref[0]                     # (N, C)
        hid = hid_ref[0]                   # (N, H)
        windmap = windmap_ref[...]         # (N, N)

        # Identity for the self-loop (two iotas; trivial per step).
        row_i = lax.broadcasted_iota(jnp.int32, (N, N), 0)
        col_i = lax.broadcasted_iota(jnp.int32, (N, N), 1)
        eye = jnp.where(row_i == col_i, 1.0, 0.0).astype(jnp.float32)

        # Wind-direction adjacency term: shared by both graph convs.
        wind_now = xt[:, 2:3] * 360.0                          # (N, 1)
        direction = jnp.abs(windmap - wind_now)
        direction = jnp.where(direction > 360.0, 180.0, direction)
        d1 = jnp.maximum(jnp.cos(direction * (jnp.pi / 180.0)), 0.0)
        c_in = xt[:, 0:1]                                      # (N, 1)

        def graph_conv(hidden_g, ab, w2t, b2, w1t, b1):
            # a = relu(liner2(d1) + liner3(adj));  liner3(adj) precomputed (ab).
            a = jnp.maximum(
                jnp.dot(d1, w2t, preferred_element_type=jnp.float32) + b2 + ab, 0.0)
            ap = a + eye
            d = jnp.sum(ap, axis=1, keepdims=True)             # (N, 1)
            dis = lax.rsqrt(d)
            dis = jnp.where(jnp.isinf(dis), 0.0, dis)
            m2 = dis * ap                                      # (N, N)
            # merged [inputs | hidden] operand; L @ C = dis * ((dis*A')^T @ C)
            cat = jnp.concatenate([c_in, hidden_g], axis=1)    # (N, H+1)
            dn = (((0,), (0,)), ((), ()))                      # contract lhs axis 0
            t = lax.dot_general(m2, cat, dn, preferred_element_type=jnp.float32)
            atc = dis * t                                      # (N, H+1)
            return jnp.dot(atc, w1t, preferred_element_type=jnp.float32) + b1

        # ---- graph_conv1 -> (N, 2H) ----
        gc1 = graph_conv(hid, ab1_ref[...], w2t1_ref[...], b21_ref[...],
                         w1t1_ref[...], b11_ref[...])

        # torch: reshape (N*2H,) -> (2H, N); reshape-free: stack lane windows then
        # apply the precomputed row permutation on the MXU.
        S = jnp.concatenate([gc1[:, q * N:(q + 1) * N] for q in range(k1)], axis=0)
        xc = jnp.dot(pconc_ref[...], S, preferred_element_type=jnp.float32)   # (2H, N)

        # ---- ChannelAttention (both pooled branches in a single MLP pass) ----
        avg_c = jnp.mean(xc, axis=1, keepdims=True)            # (2H, 1)
        max_c = jnp.max(xc, axis=1, keepdims=True)             # (2H, 1)
        pooled = jnp.concatenate([avg_c, max_c], axis=1)       # (2H, 2)
        h1 = jnp.maximum(jnp.dot(caw1_ref[...], pooled,
                                 preferred_element_type=jnp.float32), 0.0)
        h2 = jnp.dot(caw2_ref[...], h1, preferred_element_type=jnp.float32)   # (2H, 2)
        ca = jax.nn.sigmoid(h2[:, 0:1] + h2[:, 1:2])           # (2H, 1)
        xc = xc * ca

        # ---- SpatialAttention (precomputed band matrix, one matmul) ----
        avg_s = jnp.mean(xc, axis=0, keepdims=True)            # (1, N)
        max_s = jnp.max(xc, axis=0, keepdims=True)             # (1, N)
        xs = jnp.concatenate([avg_s, max_s], axis=1)           # (1, 2N)
        sa = jax.nn.sigmoid(jnp.dot(xs, saband_ref[...],
                                    preferred_element_type=jnp.float32))      # (1, N)
        xc = xc * sa
        att = jax.nn.sigmoid(xc)                               # (2H, N)

        # torch: flatten, sigmoid, chunk -> r, u, each row-major reshaped to (N, H).
        # Reshape-free: one selector matmul + lane concats (exact flat ordering).
        T = jnp.dot(gall_ref[...], att, preferred_element_type=jnp.float32)   # (2H, N)
        r_g = jnp.concatenate([T[p * N:(p + 1) * N, :] for p in range(k2)], axis=1)
        u_g = jnp.concatenate([T[(k2 + p) * N:(k2 + p + 1) * N, :] for p in range(k2)],
                              axis=1)                          # (N, H) each

        # ---- graph_conv2 on r-gated hidden, then GRU update ----
        gc2 = graph_conv(r_g * hid, ab2_ref[...], w2t2_ref[...], b22_ref[...],
                         w1t2_ref[...], b12_ref[...])          # (N, H)
        new_h = u_g * hid + (1.0 - u_g) * jnp.tanh(gc2)
        out_ref[0] = new_h.astype(out_ref.dtype)

    return kernel


# ---------------------------------------------------------------------------
# TGCNCell forward
# ---------------------------------------------------------------------------
@functools.partial(jax.jit, static_argnums=(3,))
def tgcn_cell_forward(inputs, hidden, params, H):
    B, C, N = inputs.shape
    assert H % N == 0 and (2 * H) % N == 0, (
        "reshape-free relayout requires num_nodes | hidden_dim")

    inputs_t = jnp.transpose(inputs, (0, 2, 1)).astype(jnp.float32)   # (B, N, C)
    hidden_3d = hidden.reshape(B, N, H).astype(jnp.float32)

    # ---- batch-invariant precompute (hoisted out of the kernel) ----
    a_base1 = params["adj"] @ params["gc1_w3"].T + params["gc1_b3"][None, :]
    a_base2 = params["adj"] @ params["gc2_w3"].T + params["gc2_b3"][None, :]
    w2t1, b21 = params["gc1_w2"].T, params["gc1_b2"].reshape(1, N)
    w2t2, b22 = params["gc2_w2"].T, params["gc2_b2"].reshape(1, N)
    w1t1, b11 = params["gc1_w1"].T, params["gc1_b1"].reshape(1, 2 * H)
    w1t2, b12 = params["gc2_w1"].T, params["gc2_b1"].reshape(1, H)
    saband = _spatial_band(params["sa_w"], N)                  # (2N, N)
    pconc = _conc_perm(N, 2 * H)                               # (2H, 2H)
    gall = _chunk_perm(N, H)                                   # (2H, 2H)
    r_ca = params["ca_w1"].shape[0]

    kernel = _make_cell_kernel(N, H)
    const = lambda shape: pl.BlockSpec(shape, lambda b: (0, 0))
    in_specs = [
        pl.BlockSpec((1, N, C), lambda b: (b, 0, 0)),          # inputs (node-major)
        pl.BlockSpec((1, N, H), lambda b: (b, 0, 0)),          # hidden
        const((N, N)),                                         # windmap
        const((N, N)), const((N, N)), const((1, N)),           # a_base1, w2t1, b21
        const((H + 1, 2 * H)), const((1, 2 * H)),              # w1t1, b11
        const((N, N)), const((N, N)), const((1, N)),           # a_base2, w2t2, b22
        const((H + 1, H)), const((1, H)),                      # w1t2, b12
        const((r_ca, 2 * H)), const((2 * H, r_ca)),            # ca_w1, ca_w2
        const((2 * N, N)),                                     # spatial band
        const((2 * H, 2 * H)), const((2 * H, 2 * H)),          # pconc, gall
    ]

    out3d = pl.pallas_call(
        kernel,
        out_shape=jax.ShapeDtypeStruct((B, N, H), jnp.float32),
        grid=(B,),
        in_specs=in_specs,
        out_specs=pl.BlockSpec((1, N, H), lambda b: (b, 0, 0)),
        compiler_params=pltpu.CompilerParams(dimension_semantics=("parallel",)),
    )(inputs_t, hidden_3d, params["windd"], a_base1, w2t1, b21, w1t1, b11,
      a_base2, w2t2, b22, w1t2, b12, params["ca_w1"], params["ca_w2"],
      saband, pconc, gall)

    new_hidden = out3d.reshape(B, N * H)
    return new_hidden, new_hidden


if __name__ == "__main__":
    B, C, N, H = 2, 3, 16, 32      # batch, input channels, num_nodes(=input_dim), hidden_dim
    key = jax.random.PRNGKey(0)
    keys = jax.random.split(key, 20)

    def u(k, shape, s=0.2):
        return (jax.random.uniform(k, shape, jnp.float32) - 0.5) * 2.0 * s

    inputs = jax.random.uniform(keys[0], (B, C, N), jnp.float32)    # ch 2 = wind fraction
    hidden = jax.random.uniform(keys[1], (B, N * H), jnp.float32)   # (B, N*H)
    adj = jax.random.uniform(keys[2], (N, N), jnp.float32)
    windd = jax.random.uniform(keys[3], (N, N), jnp.float32) * 360.0

    params = dict(
        adj=adj, windd=windd,
        gc1_w1=u(keys[4], (2 * H, H + 1)), gc1_b1=u(keys[5], (2 * H,)),
        gc1_w2=u(keys[6], (N, N)), gc1_b2=u(keys[7], (N,)),
        gc1_w3=u(keys[8], (N, N)), gc1_b3=u(keys[9], (N,)),
        gc2_w1=u(keys[10], (H, H + 1)), gc2_b1=u(keys[11], (H,)),
        gc2_w2=u(keys[12], (N, N)), gc2_b2=u(keys[13], (N,)),
        gc2_w3=u(keys[14], (N, N)), gc2_b3=u(keys[15], (N,)),
        ca_w1=u(keys[16], (2 * H // 16, 2 * H)),   # Conv1d(2H, 2H//16, 1) weight (squeezed)
        ca_w2=u(keys[17], (2 * H, 2 * H // 16)),   # Conv1d(2H//16, 2H, 1) weight (squeezed)
        sa_w=u(keys[18], (2, 7)),                  # Conv1d(2, 1, 7) weight (squeezed)
    )

    new_h, _ = tgcn_cell_forward(inputs, hidden, params, H)
    new_h = jax.block_until_ready(new_h)
    assert new_h.shape == (B, N * H)
    assert bool(jnp.all(jnp.isfinite(new_h)))
    print("KERNEL_OK")
</pallas_src>

<mosaic_0001>
module attributes {stable_mosaic.version = 11 : i64} {
  func.func @kernel(%arg0: i32, %arg1: memref<1x16x3xf32, #tpu.memory_space<vmem>>, %arg2: memref<1x16x32xf32, #tpu.memory_space<vmem>>, %arg3: memref<16x16xf32, #tpu.memory_space<vmem>>, %arg4: memref<16x16xf32, #tpu.memory_space<vmem>>, %arg5: memref<16x16xf32, #tpu.memory_space<vmem>>, %arg6: memref<1x16xf32, #tpu.memory_space<vmem>>, %arg7: memref<33x64xf32, #tpu.memory_space<vmem>>, %arg8: memref<1x64xf32, #tpu.memory_space<vmem>>, %arg9: memref<16x16xf32, #tpu.memory_space<vmem>>, %arg10: memref<16x16xf32, #tpu.memory_space<vmem>>, %arg11: memref<1x16xf32, #tpu.memory_space<vmem>>, %arg12: memref<33x32xf32, #tpu.memory_space<vmem>>, %arg13: memref<1x32xf32, #tpu.memory_space<vmem>>, %arg14: memref<4x64xf32, #tpu.memory_space<vmem>>, %arg15: memref<64x4xf32, #tpu.memory_space<vmem>>, %arg16: memref<32x16xf32, #tpu.memory_space<vmem>>, %arg17: memref<64x64xf32, #tpu.memory_space<vmem>>, %arg18: memref<64x64xf32, #tpu.memory_space<vmem>>, %arg19: memref<1x16x32xf32, #tpu.memory_space<vmem>>) attributes {dimension_semantics = [#tpu.dimension_semantics<parallel>], iteration_bounds = array<i64: 2>, scalar_prefetch = 0 : i64, scratch_operands = 0 : i64, tpu.core_type = #tpu.core_type<tc>, window_params = [{transform_indices = @transform_0, window_bounds = array<i64: 1, 16, 3>}, {transform_indices = @transform_1, window_bounds = array<i64: 1, 16, 32>}, {pipeline_mode = #tpu.pipeline_mode<synchronous>, transform_indices = @transform_2, window_bounds = array<i64: 16, 16>}, {pipeline_mode = #tpu.pipeline_mode<synchronous>, transform_indices = @transform_3, window_bounds = array<i64: 16, 16>}, {pipeline_mode = #tpu.pipeline_mode<synchronous>, transform_indices = @transform_4, window_bounds = array<i64: 16, 16>}, {pipeline_mode = #tpu.pipeline_mode<synchronous>, transform_indices = @transform_5, window_bounds = array<i64: 1, 16>}, {pipeline_mode = #tpu.pipeline_mode<synchronous>, transform_indices = @transform_6, window_bounds = array<i64: 33, 64>}, {pipeline_mode = #tpu.pipeline_mode<synchronous>, transform_indices = @transform_7, window_bounds = array<i64: 1, 64>}, {pipeline_mode = #tpu.pipeline_mode<synchronous>, transform_indices = @transform_8, window_bounds = array<i64: 16, 16>}, {pipeline_mode = #tpu.pipeline_mode<synchronous>, transform_indices = @transform_9, window_bounds = array<i64: 16, 16>}, {pipeline_mode = #tpu.pipeline_mode<synchronous>, transform_indices = @transform_10, window_bounds = array<i64: 1, 16>}, {pipeline_mode = #tpu.pipeline_mode<synchronous>, transform_indices = @transform_11, window_bounds = array<i64: 33, 32>}, {pipeline_mode = #tpu.pipeline_mode<synchronous>, transform_indices = @transform_12, window_bounds = array<i64: 1, 32>}, {pipeline_mode = #tpu.pipeline_mode<synchronous>, transform_indices = @transform_13, window_bounds = array<i64: 4, 64>}, {pipeline_mode = #tpu.pipeline_mode<synchronous>, transform_indices = @transform_14, window_bounds = array<i64: 64, 4>}, {pipeline_mode = #tpu.pipeline_mode<synchronous>, transform_indices = @transform_15, window_bounds = array<i64: 32, 16>}, {pipeline_mode = #tpu.pipeline_mode<synchronous>, transform_indices = @transform_16, window_bounds = array<i64: 64, 64>}, {pipeline_mode = #tpu.pipeline_mode<synchronous>, transform_indices = @transform_17, window_bounds = array<i64: 64, 64>}, {transform_indices = @transform_18, window_bounds = array<i64: 1, 16, 32>}]} {
    %c0 = arith.constant 0 : index
    %c0_0 = arith.constant 0 : index
    %c0_1 = arith.constant 0 : index
    %0 = vector.load %arg1[%c0, %c0_0, %c0_1] : memref<1x16x3xf32, #tpu.memory_space<vmem>>, vector<1x16x3xf32>
    %1 = vector.shape_cast %0 : vector<1x16x3xf32> to vector<16x3xf32>
    %c0_2 = arith.constant 0 : index
    %c0_3 = arith.constant 0 : index
    %c0_4 = arith.constant 0 : index
    %2 = vector.load %arg2[%c0_2, %c0_3, %c0_4] : memref<1x16x32xf32, #tpu.memory_space<vmem>>, vector<1x16x32xf32>
    %3 = vector.shape_cast %2 : vector<1x16x32xf32> to vector<16x32xf32>
    %c0_5 = arith.constant 0 : index
    %c0_6 = arith.constant 0 : index
    %4 = vector.load %arg3[%c0_5, %c0_6] : memref<16x16xf32, #tpu.memory_space<vmem>>, vector<16x16xf32>
    %5 = tpu.iota {dimensions = array<i32: 0>} : vector<16x16xi32>
    %6 = tpu.iota {dimensions = array<i32: 1>} : vector<16x16xi32>
    %7 = arith.cmpi eq, %5, %6 : vector<16x16xi32>
    %cst = arith.constant 1.000000e+00 : f32
    %cst_7 = arith.constant 0.000000e+00 : f32
    %8 = vector.broadcast %cst : f32 to vector<16x16xf32>
    %9 = vector.broadcast %cst_7 : f32 to vector<16x16xf32>
    %10 = arith.select %7, %8, %9 : vector<16x16xi1>, vector<16x16xf32>
    %11 = vector.extract_strided_slice %1 {offsets = [0, 2], sizes = [16, 1], strides = [1, 1]} : vector<16x3xf32> to vector<16x1xf32>
    %cst_8 = arith.constant 3.600000e+02 : f32
    %12 = vector.broadcast %cst_8 : f32 to vector<16x1xf32>
    %13 = arith.mulf %11, %12 : vector<16x1xf32>
    %14 = vector.broadcast %13 : vector<16x1xf32> to vector<16x16xf32>
    %15 = arith.subf %4, %14 : vector<16x16xf32>
    %16 = math.absf %15 : vector<16x16xf32>
    %cst_9 = arith.constant 3.600000e+02 : f32
    %17 = vector.broadcast %cst_9 : f32 to vector<16x16xf32>
    %18 = arith.cmpf ogt, %16, %17 : vector<16x16xf32>
    %cst_10 = arith.constant 1.800000e+02 : f32
    %19 = vector.broadcast %cst_10 : f32 to vector<16x16xf32>
    %20 = arith.select %18, %19, %16 : vector<16x16xi1>, vector<16x16xf32>
    %cst_11 = arith.constant 0.0174532924 : f32
    %21 = vector.broadcast %cst_11 : f32 to vector<16x16xf32>
    %22 = arith.mulf %20, %21 : vector<16x16xf32>
    %23 = math.cos %22 : vector<16x16xf32>
    %cst_12 = arith.constant 0.000000e+00 : f32
    %24 = vector.broadcast %cst_12 : f32 to vector<16x16xf32>
    %25 = arith.maximumf %23, %24 : vector<16x16xf32>
    %26 = vector.extract_strided_slice %1 {offsets = [0, 0], sizes = [16, 1], strides = [1, 1]} : vector<16x3xf32> to vector<16x1xf32>
    %c0_13 = arith.constant 0 : index
    %c0_14 = arith.constant 0 : index
    %27 = vector.load %arg4[%c0_13, %c0_14] : memref<16x16xf32, #tpu.memory_space<vmem>>, vector<16x16xf32>
    %c0_15 = arith.constant 0 : index
    %c0_16 = arith.constant 0 : index
    %28 = vector.load %arg5[%c0_15, %c0_16] : memref<16x16xf32, #tpu.memory_space<vmem>>, vector<16x16xf32>
    %c0_17 = arith.constant 0 : index
    %c0_18 = arith.constant 0 : index
    %29 = vector.load %arg6[%c0_17, %c0_18] : memref<1x16xf32, #tpu.memory_space<vmem>>, vector<1x16xf32>
    %c0_19 = arith.constant 0 : index
    %c0_20 = arith.constant 0 : index
    %30 = vector.load %arg7[%c0_19, %c0_20] : memref<33x64xf32, #tpu.memory_space<vmem>>, vector<33x64xf32>
    %c0_21 = arith.constant 0 : index
    %c0_22 = arith.constant 0 : index
    %31 = vector.load %arg8[%c0_21, %c0_22] : memref<1x64xf32, #tpu.memory_space<vmem>>, vector<1x64xf32>
    %cst_23 = arith.constant dense<0.000000e+00> : vector<16x16xf32>
    %32 = tpu.matmul %25, %28, %cst_23 {dimension_numbers = #tpu.dot_dimension_numbers<[1], [0], [0], [1], [0, 0, 1, 1], [], []>} : vector<16x16xf32>, vector<16x16xf32>, vector<16x16xf32> -> vector<16x16xf32>
    %33 = vector.broadcast %29 : vector<1x16xf32> to vector<16x16xf32>
    %34 = arith.addf %32, %33 : vector<16x16xf32>
    %35 = arith.addf %34, %27 : vector<16x16xf32>
    %cst_24 = arith.constant 0.000000e+00 : f32
    %36 = vector.broadcast %cst_24 : f32 to vector<16x16xf32>
    %37 = arith.maximumf %35, %36 : vector<16x16xf32>
    %38 = arith.addf %37, %10 : vector<16x16xf32>
    %cst_25 = arith.constant dense<0.000000e+00> : vector<16xf32>
    %39 = vector.multi_reduction <add>, %38, %cst_25 [1] : vector<16x16xf32> to vector<16xf32>
    %40 = vector.shape_cast %39 : vector<16xf32> to vector<16x1xf32>
    %41 = math.rsqrt %40 : vector<16x1xf32>
    %42 = math.absf %41 : vector<16x1xf32>
    %cst_26 = arith.constant 0x7F800000 : f32
    %43 = vector.broadcast %cst_26 : f32 to vector<16x1xf32>
    %44 = arith.cmpf oeq, %42, %43 : vector<16x1xf32>
    %cst_27 = arith.constant 0.000000e+00 : f32
    %45 = vector.broadcast %cst_27 : f32 to vector<16x1xf32>
    %46 = arith.select %44, %45, %41 : vector<16x1xi1>, vector<16x1xf32>
    %47 = vector.broadcast %46 : vector<16x1xf32> to vector<16x16xf32>
    %48 = arith.mulf %47, %38 : vector<16x16xf32>
    %49 = tpu.concatenate %26, %3 in 1 : vector<16x1xf32>, vector<16x32xf32> -> vector<16x33xf32>
    %cst_28 = arith.constant dense<0.000000e+00> : vector<16x33xf32>
    %50 = tpu.matmul %48, %49, %cst_28 {dimension_numbers = #tpu.dot_dimension_numbers<[0], [0], [1], [1], [0, 1, 1, 1], [], []>} : vector<16x16xf32>, vector<16x33xf32>, vector<16x33xf32> -> vector<16x33xf32>
    %51 = vector.broadcast %46 : vector<16x1xf32> to vector<16x33xf32>
    %52 = arith.mulf %51, %50 : vector<16x33xf32>
    %cst_29 = arith.constant dense<0.000000e+00> : vector<16x64xf32>
    %53 = tpu.matmul %52, %30, %cst_29 {dimension_numbers = #tpu.dot_dimension_numbers<[1], [0], [0], [1], [0, 0, 1, 1], [], []>} : vector<16x33xf32>, vector<33x64xf32>, vector<16x64xf32> -> vector<16x64xf32>
    %54 = vector.broadcast %31 : vector<1x64xf32> to vector<16x64xf32>
    %55 = arith.addf %53, %54 : vector<16x64xf32>
    %56 = vector.extract_strided_slice %55 {offsets = [0, 0], sizes = [16, 16], strides = [1, 1]} : vector<16x64xf32> to vector<16x16xf32>
    %57 = vector.extract_strided_slice %55 {offsets = [0, 16], sizes = [16, 16], strides = [1, 1]} : vector<16x64xf32> to vector<16x16xf32>
    %58 = vector.extract_strided_slice %55 {offsets = [0, 32], sizes = [16, 16], strides = [1, 1]} : vector<16x64xf32> to vector<16x16xf32>
    %59 = vector.extract_strided_slice %55 {offsets = [0, 48], sizes = [16, 16], strides = [1, 1]} : vector<16x64xf32> to vector<16x16xf32>
    %60 = tpu.concatenate %56, %57, %58, %59 in 0 : vector<16x16xf32>, vector<16x16xf32>, vector<16x16xf32>, vector<16x16xf32> -> vector<64x16xf32>
    %c0_30 = arith.constant 0 : index
    %c0_31 = arith.constant 0 : index
    %61 = vector.load %arg17[%c0_30, %c0_31] : memref<64x64xf32, #tpu.memory_space<vmem>>, vector<64x64xf32>
    %cst_32 = arith.constant dense<0.000000e+00> : vector<64x16xf32>
    %62 = tpu.matmul %61, %60, %cst_32 {dimension_numbers = #tpu.dot_dimension_numbers<[1], [0], [0], [1], [0, 0, 1, 1], [], []>} : vector<64x64xf32>, vector<64x16xf32>, vector<64x16xf32> -> vector<64x16xf32>
    %cst_33 = arith.constant dense<0.000000e+00> : vector<64xf32>
    %63 = vector.multi_reduction <add>, %62, %cst_33 [1] : vector<64x16xf32> to vector<64xf32>
    %64 = vector.shape_cast %63 : vector<64xf32> to vector<64x1xf32>
    %cst_34 = arith.constant 1.600000e+01 : f32
    %65 = vector.broadcast %cst_34 : f32 to vector<64x1xf32>
    %66 = arith.divf %64, %65 : vector<64x1xf32>
    %cst_35 = arith.constant dense<0xFF800000> : vector<64xf32>
    %67 = vector.multi_reduction <maximumf>, %62, %cst_35 [1] : vector<64x16xf32> to vector<64xf32>
    %68 = vector.shape_cast %67 : vector<64xf32> to vector<64x1xf32>
    %69 = tpu.concatenate %66, %68 in 1 : vector<64x1xf32>, vector<64x1xf32> -> vector<64x2xf32>
    %c0_36 = arith.constant 0 : index
    %c0_37 = arith.constant 0 : index
    %70 = vector.load %arg14[%c0_36, %c0_37] : memref<4x64xf32, #tpu.memory_space<vmem>>, vector<4x64xf32>
    %cst_38 = arith.constant dense<0.000000e+00> : vector<4x2xf32>
    %71 = tpu.matmul %70, %69, %cst_38 {dimension_numbers = #tpu.dot_dimension_numbers<[1], [0], [0], [1], [0, 0, 1, 1], [], []>} : vector<4x64xf32>, vector<64x2xf32>, vector<4x2xf32> -> vector<4x2xf32>
    %cst_39 = arith.constant 0.000000e+00 : f32
    %72 = vector.broadcast %cst_39 : f32 to vector<4x2xf32>
    %73 = arith.maximumf %71, %72 : vector<4x2xf32>
    %c0_40 = arith.constant 0 : index
    %c0_41 = arith.constant 0 : index
    %74 = vector.load %arg15[%c0_40, %c0_41] : memref<64x4xf32, #tpu.memory_space<vmem>>, vector<64x4xf32>
    %cst_42 = arith.constant dense<0.000000e+00> : vector<64x2xf32>
    %75 = tpu.matmul %74, %73, %cst_42 {dimension_numbers = #tpu.dot_dimension_numbers<[1], [0], [0], [1], [0, 0, 1, 1], [], []>} : vector<64x4xf32>, vector<4x2xf32>, vector<64x2xf32> -> vector<64x2xf32>
    %76 = vector.extract_strided_slice %75 {offsets = [0, 0], sizes = [64, 1], strides = [1, 1]} : vector<64x2xf32> to vector<64x1xf32>
    %77 = vector.extract_strided_slice %75 {offsets = [0, 1], sizes = [64, 1], strides = [1, 1]} : vector<64x2xf32> to vector<64x1xf32>
    %78 = arith.addf %76, %77 : vector<64x1xf32>
    %79 = arith.negf %78 : vector<64x1xf32>
    %80 = math.exp %79 : vector<64x1xf32>
    %cst_43 = arith.constant 1.000000e+00 : f32
    %81 = vector.broadcast %cst_43 : f32 to vector<64x1xf32>
    %82 = arith.addf %81, %80 : vector<64x1xf32>
    %83 = arith.divf %81, %82 : vector<64x1xf32>
    %84 = vector.broadcast %83 : vector<64x1xf32> to vector<64x16xf32>
    %85 = arith.mulf %62, %84 : vector<64x16xf32>
    %cst_44 = arith.constant dense<0.000000e+00> : vector<16xf32>
    %86 = vector.multi_reduction <add>, %85, %cst_44 [0] : vector<64x16xf32> to vector<16xf32>
    %87 = vector.shape_cast %86 : vector<16xf32> to vector<1x16xf32>
    %cst_45 = arith.constant 6.400000e+01 : f32
    %88 = vector.broadcast %cst_45 : f32 to vector<1x16xf32>
    %89 = arith.divf %87, %88 : vector<1x16xf32>
    %cst_46 = arith.constant dense<0xFF800000> : vector<16xf32>
    %90 = vector.multi_reduction <maximumf>, %85, %cst_46 [0] : vector<64x16xf32> to vector<16xf32>
    %91 = vector.shape_cast %90 : vector<16xf32> to vector<1x16xf32>
    %92 = tpu.concatenate %89, %91 in 1 : vector<1x16xf32>, vector<1x16xf32> -> vector<1x32xf32>
    %c0_47 = arith.constant 0 : index
    %c0_48 = arith.constant 0 : index
    %93 = vector.load %arg16[%c0_47, %c0_48] : memref<32x16xf32, #tpu.memory_space<vmem>>, vector<32x16xf32>
    %cst_49 = arith.constant dense<0.000000e+00> : vector<1x16xf32>
    %94 = tpu.matmul %92, %93, %cst_49 {dimension_numbers = #tpu.dot_dimension_numbers<[1], [0], [0], [1], [0, 0, 1, 1], [], []>} : vector<1x32xf32>, vector<32x16xf32>, vector<1x16xf32> -> vector<1x16xf32>
    %95 = arith.negf %94 : vector<1x16xf32>
    %96 = math.exp %95 : vector<1x16xf32>
    %cst_50 = arith.constant 1.000000e+00 : f32
    %97 = vector.broadcast %cst_50 : f32 to vector<1x16xf32>
    %98 = arith.addf %97, %96 : vector<1x16xf32>
    %99 = arith.divf %97, %98 : vector<1x16xf32>
    %100 = vector.broadcast %99 : vector<1x16xf32> to vector<64x16xf32>
    %101 = arith.mulf %85, %100 : vector<64x16xf32>
    %102 = arith.negf %101 : vector<64x16xf32>
    %103 = math.exp %102 : vector<64x16xf32>
    %cst_51 = arith.constant 1.000000e+00 : f32
    %104 = vector.broadcast %cst_51 : f32 to vector<64x16xf32>
    %105 = arith.addf %104, %103 : vector<64x16xf32>
    %106 = arith.divf %104, %105 : vector<64x16xf32>
    %c0_52 = arith.constant 0 : index
    %c0_53 = arith.constant 0 : index
    %107 = vector.load %arg18[%c0_52, %c0_53] : memref<64x64xf32, #tpu.memory_space<vmem>>, vector<64x64xf32>
    %cst_54 = arith.constant dense<0.000000e+00> : vector<64x16xf32>
    %108 = tpu.matmul %107, %106, %cst_54 {dimension_numbers = #tpu.dot_dimension_numbers<[1], [0], [0], [1], [0, 0, 1, 1], [], []>} : vector<64x64xf32>, vector<64x16xf32>, vector<64x16xf32> -> vector<64x16xf32>
    %109 = vector.extract_strided_slice %108 {offsets = [0, 0], sizes = [16, 16], strides = [1, 1]} : vector<64x16xf32> to vector<16x16xf32>
    %110 = vector.extract_strided_slice %108 {offsets = [16, 0], sizes = [16, 16], strides = [1, 1]} : vector<64x16xf32> to vector<16x16xf32>
    %111 = tpu.concatenate %109, %110 in 1 : vector<16x16xf32>, vector<16x16xf32> -> vector<16x32xf32>
    %112 = vector.extract_strided_slice %108 {offsets = [32, 0], sizes = [16, 16], strides = [1, 1]} : vector<64x16xf32> to vector<16x16xf32>
    %113 = vector.extract_strided_slice %108 {offsets = [48, 0], sizes = [16, 16], strides = [1, 1]} : vector<64x16xf32> to vector<16x16xf32>
    %114 = tpu.concatenate %112, %113 in 1 : vector<16x16xf32>, vector<16x16xf32> -> vector<16x32xf32>
    %115 = arith.mulf %111, %3 : vector<16x32xf32>
    %c0_55 = arith.constant 0 : index
    %c0_56 = arith.constant 0 : index
    %116 = vector.load %arg9[%c0_55, %c0_56] : memref<16x16xf32, #tpu.memory_space<vmem>>, vector<16x16xf32>
    %c0_57 = arith.constant 0 : index
    %c0_58 = arith.constant 0 : index
    %117 = vector.load %arg10[%c0_57, %c0_58] : memref<16x16xf32, #tpu.memory_space<vmem>>, vector<16x16xf32>
    %c0_59 = arith.constant 0 : index
    %c0_60 = arith.constant 0 : index
    %118 = vector.load %arg11[%c0_59, %c0_60] : memref<1x16xf32, #tpu.memory_space<vmem>>, vector<1x16xf32>
    %c0_61 = arith.constant 0 : index
    %c0_62 = arith.constant 0 : index
    %119 = vector.load %arg12[%c0_61, %c0_62] : memref<33x32xf32, #tpu.memory_space<vmem>>, vector<33x32xf32>
    %c0_63 = arith.constant 0 : index
    %c0_64 = arith.constant 0 : index
    %120 = vector.load %arg13[%c0_63, %c0_64] : memref<1x32xf32, #tpu.memory_space<vmem>>, vector<1x32xf32>
    %cst_65 = arith.constant dense<0.000000e+00> : vector<16x16xf32>
    %121 = tpu.matmul %25, %117, %cst_65 {dimension_numbers = #tpu.dot_dimension_numbers<[1], [0], [0], [1], [0, 0, 1, 1], [], []>} : vector<16x16xf32>, vector<16x16xf32>, vector<16x16xf32> -> vector<16x16xf32>
    %122 = vector.broadcast %118 : vector<1x16xf32> to vector<16x16xf32>
    %123 = arith.addf %121, %122 : vector<16x16xf32>
    %124 = arith.addf %123, %116 : vector<16x16xf32>
    %cst_66 = arith.constant 0.000000e+00 : f32
    %125 = vector.broadcast %cst_66 : f32 to vector<16x16xf32>
    %126 = arith.maximumf %124, %125 : vector<16x16xf32>
    %127 = arith.addf %126, %10 : vector<16x16xf32>
    %cst_67 = arith.constant dense<0.000000e+00> : vector<16xf32>
    %128 = vector.multi_reduction <add>, %127, %cst_67 [1] : vector<16x16xf32> to vector<16xf32>
    %129 = vector.shape_cast %128 : vector<16xf32> to vector<16x1xf32>
    %130 = math.rsqrt %129 : vector<16x1xf32>
    %131 = math.absf %130 : vector<16x1xf32>
    %cst_68 = arith.constant 0x7F800000 : f32
    %132 = vector.broadcast %cst_68 : f32 to vector<16x1xf32>
    %133 = arith.cmpf oeq, %131, %132 : vector<16x1xf32>
    %cst_69 = arith.constant 0.000000e+00 : f32
    %134 = vector.broadcast %cst_69 : f32 to vector<16x1xf32>
    %135 = arith.select %133, %134, %130 : vector<16x1xi1>, vector<16x1xf32>
    %136 = vector.broadcast %135 : vector<16x1xf32> to vector<16x16xf32>
    %137 = arith.mulf %136, %127 : vector<16x16xf32>
    %138 = tpu.concatenate %26, %115 in 1 : vector<16x1xf32>, vector<16x32xf32> -> vector<16x33xf32>
    %cst_70 = arith.constant dense<0.000000e+00> : vector<16x33xf32>
    %139 = tpu.matmul %137, %138, %cst_70 {dimension_numbers = #tpu.dot_dimension_numbers<[0], [0], [1], [1], [0, 1, 1, 1], [], []>} : vector<16x16xf32>, vector<16x33xf32>, vector<16x33xf32> -> vector<16x33xf32>
    %140 = vector.broadcast %135 : vector<16x1xf32> to vector<16x33xf32>
    %141 = arith.mulf %140, %139 : vector<16x33xf32>
    %cst_71 = arith.constant dense<0.000000e+00> : vector<16x32xf32>
    %142 = tpu.matmul %141, %119, %cst_71 {dimension_numbers = #tpu.dot_dimension_numbers<[1], [0], [0], [1], [0, 0, 1, 1], [], []>} : vector<16x33xf32>, vector<33x32xf32>, vector<16x32xf32> -> vector<16x32xf32>
    %143 = vector.broadcast %120 : vector<1x32xf32> to vector<16x32xf32>
    %144 = arith.addf %142, %143 : vector<16x32xf32>
    %145 = arith.mulf %114, %3 : vector<16x32xf32>
    %cst_72 = arith.constant 1.000000e+00 : f32
    %146 = vector.broadcast %cst_72 : f32 to vector<16x32xf32>
    %147 = arith.subf %146, %114 : vector<16x32xf32>
    %148 = math.tanh %144 : vector<16x32xf32>
    %149 = arith.mulf %147, %148 : vector<16x32xf32>
    %150 = arith.addf %145, %149 : vector<16x32xf32>
    %c0_73 = arith.constant 0 : index
    %c0_74 = arith.constant 0 : index
    %c0_75 = arith.constant 0 : index
    %151 = vector.load %arg19[%c0_73, %c0_74, %c0_75] : memref<1x16x32xf32, #tpu.memory_space<vmem>>, vector<1x16x32xf32>
    %152 = vector.shape_cast %151 : vector<1x16x32xf32> to vector<16x32xf32>
    %153 = vector.shape_cast %150 : vector<16x32xf32> to vector<1x16x32xf32>
    tpu.vector_store %arg19[%c0_73, %c0_74, %c0_75], %153 {strides = array<i32>} : memref<1x16x32xf32, #tpu.memory_space<vmem>>, vector<1x16x32xf32>,
    return
  }
  func.func @transform_0(%arg0: i32) -> (i32, i32, i32) {
    %c0_i32 = arith.constant 0 : i32
    %c0_i32_0 = arith.constant 0 : i32
    %c0_i32_1 = arith.constant 0 : i32
    return %arg0, %c0_i32, %c0_i32_0 : i32, i32, i32
  }
  func.func @transform_1(%arg0: i32) -> (i32, i32, i32) {
    %c0_i32 = arith.constant 0 : i32
    %c0_i32_0 = arith.constant 0 : i32
    %c0_i32_1 = arith.constant 0 : i32
    return %arg0, %c0_i32, %c0_i32_0 : i32, i32, i32
  }
  func.func @transform_2(%arg0: i32) -> (i32, i32) {
    %c0_i32 = arith.constant 0 : i32
    %c0_i32_0 = arith.constant 0 : i32
    %c0_i32_1 = arith.constant 0 : i32
    return %c0_i32, %c0_i32_0 : i32, i32
  }
  func.func @transform_3(%arg0: i32) -> (i32, i32) {
    %c0_i32 = arith.constant 0 : i32
    %c0_i32_0 = arith.constant 0 : i32
    %c0_i32_1 = arith.constant 0 : i32
    return %c0_i32, %c0_i32_0 : i32, i32
  }
  func.func @transform_4(%arg0: i32) -> (i32, i32) {
    %c0_i32 = arith.constant 0 : i32
    %c0_i32_0 = arith.constant 0 : i32
    %c0_i32_1 = arith.constant 0 : i32
    return %c0_i32, %c0_i32_0 : i32, i32
  }
  func.func @transform_5(%arg0: i32) -> (i32, i32) {
    %c0_i32 = arith.constant 0 : i32
    %c0_i32_0 = arith.constant 0 : i32
    %c0_i32_1 = arith.constant 0 : i32
    return %c0_i32, %c0_i32_0 : i32, i32
  }
  func.func @transform_6(%arg0: i32) -> (i32, i32) {
    %c0_i32 = arith.constant 0 : i32
    %c0_i32_0 = arith.constant 0 : i32
    %c0_i32_1 = arith.constant 0 : i32
    return %c0_i32, %c0_i32_0 : i32, i32
  }
  func.func @transform_7(%arg0: i32) -> (i32, i32) {
    %c0_i32 = arith.constant 0 : i32
    %c0_i32_0 = arith.constant 0 : i32
    %c0_i32_1 = arith.constant 0 : i32
    return %c0_i32, %c0_i32_0 : i32, i32
  }
  func.func @transform_8(%arg0: i32) -> (i32, i32) {
    %c0_i32 = arith.constant 0 : i32
    %c0_i32_0 = arith.constant 0 : i32
    %c0_i32_1 = arith.constant 0 : i32
    return %c0_i32, %c0_i32_0 : i32, i32
  }
  func.func @transform_9(%arg0: i32) -> (i32, i32) {
    %c0_i32 = arith.constant 0 : i32
    %c0_i32_0 = arith.constant 0 : i32
    %c0_i32_1 = arith.constant 0 : i32
    return %c0_i32, %c0_i32_0 : i32, i32
  }
  func.func @transform_10(%arg0: i32) -> (i32, i32) {
    %c0_i32 = arith.constant 0 : i32
    %c0_i32_0 = arith.constant 0 : i32
    %c0_i32_1 = arith.constant 0 : i32
    return %c0_i32, %c0_i32_0 : i32, i32
  }
  func.func @transform_11(%arg0: i32) -> (i32, i32) {
    %c0_i32 = arith.constant 0 : i32
    %c0_i32_0 = arith.constant 0 : i32
    %c0_i32_1 = arith.constant 0 : i32
    return %c0_i32, %c0_i32_0 : i32, i32
  }
  func.func @transform_12(%arg0: i32) -> (i32, i32) {
    %c0_i32 = arith.constant 0 : i32
    %c0_i32_0 = arith.constant 0 : i32
    %c0_i32_1 = arith.constant 0 : i32
    return %c0_i32, %c0_i32_0 : i32, i32
  }
  func.func @transform_13(%arg0: i32) -> (i32, i32) {
    %c0_i32 = arith.constant 0 : i32
    %c0_i32_0 = arith.constant 0 : i32
    %c0_i32_1 = arith.constant 0 : i32
    return %c0_i32, %c0_i32_0 : i32, i32
  }
  func.func @transform_14(%arg0: i32) -> (i32, i32) {
    %c0_i32 = arith.constant 0 : i32
    %c0_i32_0 = arith.constant 0 : i32
    %c0_i32_1 = arith.constant 0 : i32
    return %c0_i32, %c0_i32_0 : i32, i32
  }
  func.func @transform_15(%arg0: i32) -> (i32, i32) {
    %c0_i32 = arith.constant 0 : i32
    %c0_i32_0 = arith.constant 0 : i32
    %c0_i32_1 = arith.constant 0 : i32
    return %c0_i32, %c0_i32_0 : i32, i32
  }
  func.func @transform_16(%arg0: i32) -> (i32, i32) {
    %c0_i32 = arith.constant 0 : i32
    %c0_i32_0 = arith.constant 0 : i32
    %c0_i32_1 = arith.constant 0 : i32
    return %c0_i32, %c0_i32_0 : i32, i32
  }
  func.func @transform_17(%arg0: i32) -> (i32, i32) {
    %c0_i32 = arith.constant 0 : i32
    %c0_i32_0 = arith.constant 0 : i32
    %c0_i32_1 = arith.constant 0 : i32
    return %c0_i32, %c0_i32_0 : i32, i32
  }
  func.func @transform_18(%arg0: i32) -> (i32, i32, i32) {
    %c0_i32 = arith.constant 0 : i32
    %c0_i32_0 = arith.constant 0 : i32
    %c0_i32_1 = arith.constant 0 : i32
    return %arg0, %c0_i32, %c0_i32_0 : i32, i32, i32
  }
}

</mosaic_0001>

<bundles_post_ra>
// kernel: tgcn_cell_forward.1
= control target key start
LH: loop header
LB: loop body
LE: loop exit
PB: predicated region body
PF: predicated region fallthrough
CT: control target
= control target key end

     0   :  { %s3196_s27 = smov 0   ;;  %s3736_s0 = inlined_call_operand.vmem [shape: f32[2,16,3], index: 0, kind: input, shape index: {}]   ;;  %s3737_s1 = inlined_call_operand.vmem [shape: f32[2,16,32], index: 1, kind: input, shape index: {}]   ;;  %s3738_s2 = inlined_call_operand.vmem [shape: f32[16,16], index: 2, kind: input, shape index: {}]   ;;  %s3739_s3 = inlined_call_operand.vmem [shape: f32[16,16], index: 3, kind: input, shape index: {}]   ;;  %s3740_s4 = inlined_call_operand.vmem [shape: f32[16,16], index: 4, kind: input, shape index: {}]   ;;  %s3741_s5 = inlined_call_operand.vmem [shape: f32[1,16], index: 5, kind: input, shape index: {}]   ;;  %s3742_s6 = inlined_call_operand.vmem [shape: f32[33,64], index: 6, kind: input, shape index: {}]   ;;  %s3743_s7 = inlined_call_operand.vmem [shape: f32[1,64], index: 7, kind: input, shape index: {}]   ;;  %s3744_s8 = inlined_call_operand.vmem [shape: f32[16,16], index: 8, kind: input, shape index: {}]   ;;  %s3745_s9 = inlined_call_operand.vmem [shape: f32[16,16], index: 9, kind: input, shape index: {}]   ;;  %s3746_s10 = inlined_call_operand.vmem [shape: f32[1,16], index: 10, kind: input, shape index: {}]   ;;  %s3747_s11 = inlined_call_operand.vmem [shape: f32[33,32], index: 11, kind: input, shape index: {}]   ;;  %s3748_s12 = inlined_call_operand.vmem [shape: f32[1,32], index: 12, kind: input, shape index: {}]   ;;  %s3749_s13 = inlined_call_operand.vmem [shape: f32[4,64], index: 13, kind: input, shape index: {}]   ;;  %s3750_s14 = inlined_call_operand.vmem [shape: f32[64,4], index: 14, kind: input, shape index: {}]   ;;  %s3751_s15 = inlined_call_operand.vmem [shape: f32[32,16], index: 15, kind: input, shape index: {}]   ;;  %s3752_s16 = inlined_call_operand.vmem [shape: f32[64,64], index: 16, kind: input, shape index: {}]   ;;  %s3753_s17 = inlined_call_operand.vmem [shape: f32[64,64], index: 17, kind: input, shape index: {}]   ;;  %s3754_s18 = inlined_call_operand.vmem [shape: f32[2,16,32], index: 18, kind: output, shape index: {}]  }
   0x1   :  { %3756 = sst [smem:[#allocation2_spill]] %s3736_s0 }
   0x2   :  { %3757 = sst [smem:[#allocation3_spill]] %s3737_s1 }
   0x3   :  { %3758 = sst [smem:[#allocation4_spill]] %s3738_s2 }
   0x4 LB: > { %s2516_s28 = sadd.s32 4294967295, %s3082_s27   ;;  %p2520_p0 = scmp.ge.s32.totalorder %s3082_s27, 1  ;;  %s3082_s27 = sphi %s3196_s27, %s28_s27  }
   0x5   : > { %p522_p1 = scmp.lt.s32.totalorder %s3082_s27, 3 }
   0x7   : > { %p523_p2 = pnand %p2520_p0, %p522_p1 }
   0x8   : > { %p581_p3 = scmp.lt.s32.totalorder (!%p523_p2), %s2516_s28, 1  ;;  %v3084_v0 = vmov (!%p523_p2), 2   ;;  %s3759_s19 = sld [smem:[#allocation2_spill]] (!%p523_p2)  ;;  %v843_v5 = vld [vmem:[%s3740_s4] sm:$0xff] (!%p523_p2)  ;;  %v844_v6 = vld [vmem:[%s3740_s4 + $0x8] sm:$0xff] (!%p523_p2) }
   0x9   : > { %526 = sbr.rel (%p523_p2) target bundleno = 3874 (0xf22), region = 92  ;;  %2956 = vset.pattern.permute.xlu0 (!%p523_p2), %v3084_v0  ;;  %v2841_v7 = vpack.c.bf16 (!%p523_p2), %v844_v6, %v843_v5  ;;  %s3760_s25 = sld [smem:[#allocation4_spill]] (!%p523_p2)  ;;  %v3085_v40 = vmov (!%p523_p2), 683565275   ;;  %v3086_v42 = vmov (!%p523_p2), 2475754826  }
   0xa   : > { %v3087_v46 = vmov (!%p523_p2), 2131351028   ;;  %v3088_v48 = vmov (!%p523_p2), 2102212464   ;;  %v3089_v53 = vmov (!%p523_p2), 920167782  }
   0xb   : > { %2842 = vmatprep.subr.bf16.mxu1 (!%p523_p2), %v2841_v7  ;;  %v3090_v58 = vmov (!%p523_p2), 1326507024   ;;  %s3765_s24 = sld [smem:[#allocation3_spill]] (!%p523_p2)  ;;  %s3093_s20 = smov (!%p523_p2), 112  }
   0xc   : > { %2844 = vmatpush3.bf16.msra.mxu1 (!%p523_p2), %v2841_v7  ;;  %s3094_s2 = smov (!%p523_p2), 96   ;;  %s3095_s23 = smov (!%p523_p2), 80  }
   0xd   : > { %s3098_s21 = smov (!%p523_p2), 127  }
   0xf   : > { %v600_v8 = vld [vmem:[%s3760_s25] sm:$0xff] (!%p523_p2)  ;;  %v601_v11 = vld [vmem:[%s3760_s25 + $0x8] sm:$0xff] (!%p523_p2) }
  0x10   : > { %s3767_s28 = smov (!%p581_p3, %s2516_s28), 1 }
  0x11   : > { %s3204_s29 = sshll.u32 %s3767_s28, 4  ;;  %s3092_s28 = smov 1  }
  0x12   : > { %s3210_s1 = scalar_lea.vmem %s3759_s19, %s3204_s29  ;;  %s3367_s26 = scalar_lea.vmem %s3765_s24, %s3204_s29 }
  0x13   : > { %v3213_v1 = vld [vmem:[%s3210_s1] sm:$0xff]  ;;  %v3216_v2 = vld [vmem:[%s3210_s1 + $0x8] sm:$0xff]  ;;  %s3100_s24 = smov 16  }
  0x14   : > { %v611_v3 = vmul.f32 360.0, %v3213_v1  ;;  %v612_v4 = vmul.f32 360.0, %v3216_v2 }
  0x16   : > { %615 = vperm.xlu0 %2956, %v611_v3  }
  0x1a   : > { %620 = vperm.xlu0 %2956, %v612_v4  }
  0x95   : > { %v616_v9 = vpop.permute.xlu0 %615 }
  0x96   : > { %v623_v10 = vsub.f32 %v600_v8, %v616_v9 }
  0x98   : > { %v625_v12 = vand.u32 2147483647, %v623_v10 }
  0x99   : > { %v621_v13 = vpop.permute.xlu0 %620 }
  0x9a   : > { %vm627_vm0 = vcmp.gt.f32.partialorder %v625_v12, 360.0  ;;  %v624_v14 = vsub.f32 %v601_v11, %v621_v13 }
  0x9b   : > { %v629_v15 = vsel %vm627_vm0, 180.0, %v625_v12 }
  0x9c   : > { %v3232_v16 = vmul.f32 0.017453292, %v629_v15  ;;  %v626_v17 = vand.u32 2147483647, %v624_v14 }
  0x9e   : > { %v636_v18 = vand.u32 2139095040, %v3232_v16  ;;  %vm628_vm1 = vcmp.gt.f32.partialorder %v626_v17, 360.0  ;;  %v633_v25 = vand.u32 2147483647, %v3232_v16 }
  0x9f   : > { %v630_v19 = vsel %vm628_vm1, 180.0, %v626_v17 }
  0xa0   : > { %v637_v20 = vshrl.u32 %v636_v18, 23  ;;  %v3235_v21 = vmul.f32 0.017453292, %v630_v19  ;;  %v3244_v30 = vand.u32 8388607, %v633_v25 }
  0xa2   : > { %v2527_v22 = vadd.s32 4294967169, %v637_v20  ;;  %v736_v23 = vand.u32 2147483647, %v3235_v21  ;;  %v739_v24 = vand.u32 2139095040, %v3235_v21  ;;  %v641_v37 = vor.u32 8388608, %v3244_v30 }
  0xa3   : > { %vm738_vm0 = vcmp.lt.s32.totalorder %v3235_v21, 0 }
  0xa4   : > { %v643_v26 = vadd.s32 1, %v2527_v22  ;;  %v740_v27 = vshrl.u32 %v739_v24, 23  ;;  %v743_v28 = vand.u32 8388607, %v736_v23  ;;  %vm3305_vm1 = vcmp.le.f32.partialorder %v736_v23, 0.7853982 }
  0xa6   : > { %vm644_vm2 = vcmp.gt.s32.totalorder %v643_v26, 0  ;;  %v2531_v29 = vadd.s32 4294967169, %v740_v27  ;;  %v744_v32 = vor.u32 8388608, %v743_v28 }
  0xa7   : > { %v645_v31 = vsel %vm644_vm2, %v643_v26, 0  ;;  %vm635_vm2 = vcmp.lt.s32.totalorder %v3232_v16, 0 }
  0xa8   : > { %v647_v33 = vand.u32 31, %v645_v31  ;;  %v746_v34 = vadd.s32 1, %v2531_v29  ;;  %v3246_v35 = vshrl.u32 %v645_v31, 5  ;;  %v3251_v39 = vshll.u32 %v744_v32, 8 }
  0xaa   : > { %v3248_v36 = vsub.s32 32, %v647_v33  ;;  %vm747_vm3 = vcmp.gt.s32.totalorder %v746_v34, 0  ;;  %v650_v41 = vshll.u32 %v3085_v40, %v647_v33  ;;  %v653_v43 = vshll.u32 %v3086_v42, %v647_v33 }
  0xab   : > { %v748_v38 = vsel %vm747_vm3, %v746_v34, 0  ;;  %v656_v47 = vshll.u32 %v3087_v46, %v647_v33  ;;  %v659_v49 = vshll.u32 %v3088_v48, %v647_v33  ;;  %v662_v54 = vshll.u32 %v3089_v53, %v647_v33 }
  0xac   : > { %v749_v44 = vshrl.u32 %v748_v38, 5  ;;  %v750_v45 = vand.u32 31, %v748_v38  ;;  %v651_v50 = vshrl.u32 %v3086_v42, %v3248_v36  ;;  %v654_v51 = vshrl.u32 %v3087_v46, %v3248_v36 }
  0xad   : > { %v657_v52 = vshrl.u32 %v3088_v48, %v3248_v36  ;;  %v660_v57 = vshrl.u32 %v3089_v53, %v3248_v36  ;;  %v663_v59 = vshrl.u32 %v3090_v58, %v3248_v36  ;;  %vm665_vm8 = vcmp.lt.s32.totalorder %v3246_v35, 1 }
  0xae   : > { %v751_v55 = vsub.s32 32, %v750_v45  ;;  %v753_v56 = vshll.u32 %v3085_v40, %v750_v45  ;;  %v756_v60 = vshll.u32 %v3086_v42, %v750_v45  ;;  %v759_v61 = vshll.u32 %v3087_v46, %v750_v45 }
  0xaf   : > { %v762_v62 = vshll.u32 %v3088_v48, %v750_v45  ;;  %v765_v63 = vshll.u32 %v3089_v53, %v750_v45  ;;  %vm768_vm4 = vcmp.lt.s32.totalorder %v749_v44, 1  ;;  %vm769_vm5 = vcmp.lt.s32.totalorder %v749_v44, 2 }
  0xb0   : > { %v754_v0 = vshrl.u32 %v3086_v42, %v751_v55  ;;  %v757_v3 = vshrl.u32 %v3087_v46, %v751_v55  ;;  %v760_v4 = vshrl.u32 %v3088_v48, %v751_v55  ;;  %v752_v5 = vshrl.u32 %v3085_v40, %v751_v55 }
  0xb1   : > { %v763_v6 = vshrl.u32 %v3089_v53, %v751_v55  ;;  %v766_v7 = vshrl.u32 %v3090_v58, %v751_v55  ;;  %vm770_vm6 = vcmp.lt.s32.totalorder %v749_v44, 3  ;;  %vm771_vm7 = vcmp.lt.s32.totalorder %v749_v44, 4 }
  0xb2   : > { %v755_v8 = vor.u32 %v754_v0, %v753_v56  ;;  %v758_v9 = vor.u32 %v757_v3, %v756_v60  ;;  %v761_v10 = vor.u32 %v760_v4, %v759_v61  ;;  %v652_v13 = vor.u32 %v651_v50, %v650_v41 }
  0xb3   : > { %v764_v11 = vor.u32 %v763_v6, %v762_v62  ;;  %v767_v12 = vor.u32 %v766_v7, %v765_v63  ;;  %v655_v18 = vor.u32 %v654_v51, %v653_v43  ;;  %v658_v24 = vor.u32 %v657_v52, %v656_v47 }
  0xb4   : > { %v773_v14 = vsel %vm771_vm7, %v761_v10, 2102212464  ;;  %v776_v15 = vsel %vm768_vm4, %v755_v8, %v758_v9  ;;  %v780_v17 = vsel %vm768_vm4, %v758_v9, %v761_v10  ;;  %v772_v19 = vsel %vm768_vm4, %v752_v5, %v755_v8 }
  0xb5   : > { %v777_v20 = vsel %vm771_vm7, %v764_v11, 920167782  ;;  %v781_v22 = vsel %vm771_vm7, %v767_v12, 1326507024  ;;  %v774_v26 = vsel %vm770_vm6, %v758_v9, %v773_v14  ;;  %v661_v29 = vor.u32 %v660_v57, %v659_v49 }
  0xb6   : > { %v778_v27 = vsel %vm770_vm6, %v761_v10, %v777_v20  ;;  %v782_v28 = vsel %vm770_vm6, %v764_v11, %v781_v22  ;;  %v664_v32 = vor.u32 %v663_v59, %v662_v54  ;;  %v775_v42 = vsel %vm769_vm5, %v772_v19, %v774_v26 }
  0xb7   : > { %v779_v30 = vsel %vm769_vm5, %v776_v15, %v778_v27  ;;  %v783_v31 = vsel %vm769_vm5, %v780_v17, %v782_v28  ;;  %vm668_vm9 = vcmp.lt.s32.totalorder %v3246_v35, 4  ;;  %v681_v43 = vshll.u32 %v641_v37, 8 }
  0xb8   : > { %v3267_v33 = vmul.u32.u64.low %v3251_v39, %v783_v31  ;;  %v3268_v34 = vmul.u32.u64.high %v3251_v39, %v783_v31, %v3267_v33  ;;  %v3271_v38 = vmul.u32.u64.low %v3251_v39, %v779_v30  ;;  %v3272_v41 = vmul.u32.u64.high %v3251_v39, %v779_v30, %v3271_v38 }
  0xb9   : > { %vm667_vm10 = vcmp.lt.s32.totalorder %v3246_v35, 3  ;;  %v670_v45 = vsel %vm668_vm9, %v658_v24, 2102212464  ;;  %v673_v46 = vsel %vm665_vm8, %v652_v13, %v655_v18  ;;  %v674_v47 = vsel %vm668_vm9, %v661_v29, 920167782 }
  0xba   : > { %v649_v48 = vshrl.u32 %v3085_v40, %v3248_v36  ;;  %v675_v49 = vsel %vm667_vm10, %v658_v24, %v674_v47  ;;  %v677_v44 = vsel %vm665_vm8, %v655_v18, %v658_v24  ;;  %v678_v50 = vsel %vm668_vm9, %v664_v32, 1326507024 }
  0xbb   : > { %v791_v51 = vmul.u32 %v3251_v39, %v775_v42  ;;  %vm793_vm11 = vc.u32 %v3268_v34, %v3271_v38  ;;  %v794_v37 = vadd.s32 1, %v3272_v41  ;;  %vm666_vm12 = vcmp.lt.s32.totalorder %v3246_v35, 2 }
  0xbc   : > { %v669_v52 = vsel %vm665_vm8, %v649_v48, %v652_v13  ;;  %v671_v53 = vsel %vm667_vm10, %v655_v18, %v670_v45  ;;  %v676_v54 = vsel %vm666_vm12, %v673_v46, %v675_v49  ;;  %v679_v55 = vsel %vm667_vm10, %v661_v29, %v678_v50 }
  0xbd   : > { %v795_v36 = vsel %vm793_vm11, %v794_v37, %v3272_v41  ;;  %v680_v40 = vsel %vm666_vm12, %v677_v44, %v679_v55  ;;  %v3291_v56 = vmul.u32.u64.low %v681_v43, %v676_v54  ;;  %v3292_v57 = vmul.u32.u64.high %v681_v43, %v676_v54, %v3291_v56 }
  0xbe   : > { %v796_v58 = vadd.s32 %v795_v36, %v791_v51  ;;  %v3294_v39 = vmul.u32.u64.low %v681_v43, %v680_v40  ;;  %v3295_v59 = vmul.u32.u64.high %v681_v43, %v680_v40, %v3294_v39  ;;  %v672_v60 = vsel %vm666_vm12, %v669_v52, %v671_v53 }
  0xbf   : > { %v691_v62 = vadd.s32 1, %v3292_v57  ;;  %v688_v35 = vmul.u32 %v681_v43, %v672_v60  ;;  %v792_v18 = vadd.s32 %v3271_v38, %v3268_v34  ;;  %vm3315_vm3 = vcmp.le.f32.partialorder %v633_v25, 0.7853982 }
  0xc0   : > { %v797_v61 = vadd.s32 536870912, %v796_v58  ;;  %vm690_vm13 = vc.u32 %v3295_v59, %v3291_v56  ;;  %v689_v33 = vadd.s32 %v3291_v56, %v3295_v59  ;;  %vm828_vm8 = vweird.f32 %v3235_v21 }
  0xc1   : > { %v692_v0 = vsel %vm690_vm13, %v691_v62, %v3292_v57  ;;  %vm725_vm11 = vweird.f32 %v3232_v16  ;;  %vm858_vm12 = vcmask 130048  }
  0xc2   : > { %v798_v63 = vshrl.u32 %v797_v61, 30  ;;  %v693_v4 = vadd.s32 %v692_v0, %v688_v35 }
  0xc4   : > { %v799_v3 = vshll.u32 %v798_v63, 30  ;;  %v694_v6 = vadd.s32 536870912, %v693_v4  ;;  %v822_v55 = vsub.s32 4, %v798_v63 }
  0xc6   : > { %v800_v5 = vsub.s32 %v796_v58, %v799_v3  ;;  %v695_v8 = vshrl.u32 %v694_v6, 30  ;;  %v823_v56 = vsel %vm738_vm0, %v822_v55, %v798_v63 }
  0xc7   : > { %v825_v59 = vsel %vm3305_vm1, 0, %v823_v56 }
  0xc8   : > { %v802_v7 = vsub.s32 0, %v800_v5  ;;  %v696_v10 = vshll.u32 %v695_v8, 30  ;;  %v719_v58 = vsub.s32 4, %v695_v8  ;;  %v829_v61 = vand.u32 3, %v825_v59 }
  0xca   : > { %v2532_v9 = vmin.u32 %v802_v7, %v800_v5  ;;  %v697_v12 = vsub.s32 %v693_v4, %v696_v10  ;;  %v720_v60 = vsel %vm635_vm2, %v719_v58, %v695_v8  ;;  %vm831_vm4 = vcmp.eq.s32.totalorder %v829_v61, 0 }
  0xcb   : > { %v722_v25 = vsel %vm3315_vm3, 0, %v720_v60  ;;  %vm834_vm5 = vcmp.eq.s32.totalorder %v829_v61, 2  ;;  %vm830_vm6 = vcmp.lt.s32.totalorder %v829_v61, 2  ;;  %v846_v61 = vld [vmem:[%s3742_s6] sm:$0xff] }
  0xcc   : > { %v804_v11 = vclz %v2532_v9  ;;  %v699_v14 = vsub.s32 0, %v697_v12 }
  0xce   : > { %v2533_v13 = vadd.s32 4294967294, %v804_v11  ;;  %v2528_v15 = vmin.u32 %v699_v14, %v697_v12 }
  0xd0   : > { %vm2534_vm14 = vcmp.lt.s32.totalorder %v2533_v13, 0  ;;  %v701_v22 = vclz %v2528_v15 }
  0xd1   : > { %v807_v17 = vsel %vm2534_vm14, 0, %v2533_v13 }
  0xd2   : > { %v808_v19 = vsub.s32 32, %v807_v17  ;;  %v812_v20 = vsub.s32 4294967266, %v807_v17  ;;  %v809_v24 = vshll.u32 %v800_v5, %v807_v17  ;;  %v2529_v28 = vadd.s32 4294967294, %v701_v22  ;;  %v842_v22 = vld [vmem:[%s3739_s3 + $0x8] sm:$0xff] }
  0xd3   : > { %v726_v5 = vand.u32 3, %v722_v25 }
  0xd4   : > { %v810_v26 = vshrl.u32 %v792_v18, %v808_v19  ;;  %v813_v27 = vadd.s32 127, %v812_v20  ;;  %vm2530_vm15 = vcmp.lt.s32.totalorder %v2529_v28, 0 }
  0xd5   : > { %v704_v31 = vsel %vm2530_vm15, 0, %v2529_v28  ;;  %vm731_vm7 = vcmp.eq.s32.totalorder %v726_v5, 2  ;;  %vm728_vm9 = vcmp.eq.s32.totalorder %v726_v5, 0  ;;  %vm727_vm10 = vcmp.lt.s32.totalorder %v726_v5, 2  ;;  %v841_v28 = vld [vmem:[%s3739_s3] sm:$0xff] }
  0xd6   : > { %v811_v29 = vor.u32 %v810_v26, %v809_v24  ;;  %v814_v30 = vshll.u32 %v813_v27, 23  ;;  %v705_v41 = vsub.s32 32, %v704_v31  ;;  %v709_v42 = vsub.s32 4294967266, %v704_v31 }
  0xd7   : > { %v706_v34 = vshll.u32 %v697_v12, %v704_v31 }
  0xd8   : > { %v815_v32 = vor.u32 4788187, %v814_v30  ;;  %v818_v45 = vcvt.s32.f32 %v811_v29  ;;  %v707_v46 = vshrl.u32 %v689_v33, %v705_v41  ;;  %v710_v38 = vadd.s32 127, %v709_v42 }
  0xd9   : > { %v3091_v33 = vmov 0.0  }
  0xda   : > { %v816_v43 = vand.u32 2147483647, %v815_v32  ;;  %v708_v48 = vor.u32 %v707_v46, %v706_v34  ;;  %v711_v49 = vshll.u32 %v710_v38, 23 }
  0xdc   : > { %v819_v47 = vmul.f32 %v818_v45, %v816_v43  ;;  %v712_v50 = vor.u32 4788187, %v711_v49  ;;  %v715_v54 = vcvt.s32.f32 %v708_v48  ;;  %v598_v48 = vld [vmem:[%s3367_s26] sm:$0xff]  ;;  %v599_v49 = vld [vmem:[%s3367_s26 + $0x8] sm:$0xff] }
  0xde   : > { %v820_v44 = vxor.u32 2147483648, %v819_v47  ;;  %v713_v53 = vand.u32 2147483647, %v712_v50 }
  0xe0   : > { %v821_v37 = vsel %vm738_vm0, %v820_v44, %v819_v47  ;;  %v716_v36 = vmul.f32 %v715_v54, %v713_v53  ;;  %v2957_v44 = vpack.i.bf16 %v599_v49, %v598_v48  ;;  %v1205_v48 = vld [vmem:[%s3752_s16 + $0x28] sm:$0xff]  ;;  %v1206_v49 = vld [vmem:[%s3752_s16 + $0x30] sm:$0xff] }
  0xe1   : > { %v824_v52 = vsel %vm3305_vm1, %v3235_v21, %v821_v37  ;;  %v602_v21 = vlaneseq  ;;  %vm970_vm1 = vcmask 7168  }
  0xe2   : > { %2984 = vcosq.f32 %v824_v52  ;;  %v717_v40 = vxor.u32 2147483648, %v716_v36  ;;  %2958 = vrot.lane.b32.xlu0 %v2957_v44, %s3092_s28  ;;  %v1207_v44 = vld [vmem:[%s3752_s16 + $0x38] sm:$0xff] }
  0xe3   : > { %2986 = vsinq.f32 %v824_v52  ;;  %v3340_v19 = vshrl.u32 %v602_v21, 7  ;;  %v606_v20 = vand.u32 127, %v602_v21 }
  0xe4   : > { %v718_v57 = vsel %vm635_vm2, %v717_v40, %v716_v36  ;;  %vm1101_vm2 = vcmask 1040384  }
  0xe5   : > { %v721_v39 = vsel %vm3315_vm3, %v3232_v16, %v718_v57  ;;  %v2535_v16 = vld [vmem:[%s3741_s5] ss:$0 sm:$0xff]  ;;  %v604_v26 = vadd.s32 8, %v3340_v19  ;;  %vm607_vm13 = vcmp.eq.s32.totalorder %v3340_v19, %v606_v20  ;;  %vm1094_vm3 = vcmask 269312  }
  0xe6   : > { %2988 = vcosq.f32 %v721_v39  ;;  %v3354_v41 = vsel %vm607_vm13, 1.0, %v3091_v33 }
  0xe7   : > { %2990 = vsinq.f32 %v721_v39  ;;  %vm608_vm14 = vcmp.eq.s32.totalorder %v604_v26, %v606_v20 }
  0xe8   : > { %v3357_v45 = vsel %vm608_vm14, 1.0, %v3091_v33 }
  0xec   : > { %v2985_v62 = vpop.eup %2984 }
  0xed   : > { %v2987_v63 = vpop.eup %2986  ;;  %v835_v35 = vxor.u32 2147483648, %v2985_v62 }
  0xee   : > { %v832_v0 = vxor.u32 2147483648, %v2987_v63 }
  0xef   : > { %v836_v4 = vsel %vm834_vm5, %v835_v35, %v2987_v63  ;;  %vm3097_vm5 = vmmov 0  }
  0xf0   : > { %v833_v3 = vsel %vm831_vm4, %v2985_v62, %v832_v0  ;;  %v2989_v6 = vpop.eup %2988  ;;  %v847_v62 = vld [vmem:[%s3742_s6 + $0x8] sm:$0xff]  ;;  %vm1208_vm4 = vcmask 523264  }
  0xf1   : > { %v837_v7 = vsel %vm830_vm6, %v833_v3, %v836_v4  ;;  %v2991_v9 = vpop.eup %2990  ;;  %v732_v10 = vxor.u32 2147483648, %v2989_v6  ;;  %v2849_v63 = vpack.c.bf16 %v847_v62, %v846_v61  ;;  %v850_v3 = vld [vmem:[%s3742_s6 + $0x20] sm:$0x1]  ;;  %vm1486_vm6 = vcmask 31744  }
  0xf2   : > { %v729_v11 = vxor.u32 2147483648, %v2991_v9  ;;  %v3327_v12 = vsel %vm828_vm8, nan, %v837_v7  ;;  %vm1809_vm8 = vcmask 261120  }
  0xf3   : > { %v733_v8 = vsel %vm731_vm7, %v732_v10, %v2991_v9  ;;  %v840_v17 = vmax.f32 %v3327_v12, 0.0  ;;  %2850 = vmatprep.subr.bf16.mxu0 %v2849_v63  ;;  %v2540_v9 = vld [vmem:[%s3743_s7] ss:$0 sm:$0xff]  ;;  %vm1511_vm7 = vcmask 1043456  }
  0xf4   : > { %v730_v13 = vsel %vm728_vm9, %v2989_v6, %v729_v11  ;;  %2852 = vmatpush3.bf16.msra.mxu0 %v2849_v63  ;;  %v2108_v12 = vld [vmem:[%s3744_s8] sm:$0xff] }
  0xf5   : > { %v734_v14 = vsel %vm727_vm10, %v730_v13, %v733_v8 }
  0xf6   : > { %v3330_v15 = vsel %vm725_vm11, nan, %v734_v14 }
  0xf7   : > { %v839_v18 = vmax.f32 %v3330_v15, 0.0 }
  0xf9   : > { %2691 = vmatprep.mubr.msk.f32.mxu1 %vm858_vm12, %v839_v18 }
  0xfa   : > { %2692 = vmatmul.mubr.msk.f32.vlgmr.msra.gmra.mrb[0].mxu1 %vm858_vm12, %v840_v17 }
 0x154   : > { %v2959_v53 = vpop.permute.xlu0 %2958 }
 0x155   : > { %v2961_v36 = vunpack.i.h.bf16 %v2959_v53  ;;  %v2960_v40 = vunpack.i.l.bf16 %v2959_v53 }
 0x157   : > { %v971_v58 = vsel %vm970_vm1, %v3213_v1, %v2960_v40  ;;  %v972_v39 = vsel %vm970_vm1, %v3216_v2, %v2961_v36  ;;  %v848_v1 = vld [vmem:[%s3742_s6 + $0x10] sm:$0xff]  ;;  %v849_v2 = vld [vmem:[%s3742_s6 + $0x18] sm:$0xff] }
 0x158   : > { %v2845_v60 = vpack.c.bf16 %v972_v39, %v971_v58  ;;  %v2853_v35 = vpack.c.bf16 %v849_v2, %v848_v1  ;;  %v3096_v1 = vmov 0.0|0.0  }
 0x15a   : > { %2846 = vmatprep.subr.bf16.mxu1 %v2845_v60  ;;  %2854 = vmatprep.subr.bf16.mxu0 %v2853_v35 }
 0x15b   : > { %2848 = vmatpush3.bf16.msra.mxu1 %v2845_v60  ;;  %2856 = vmatpush3.bf16.msra.mxu0 %v2853_v35 }
 0x15c   : > { %2709 = vmatprep.subr.msk.mxu0 %vm1101_vm2, %v850_v3 }
 0x15f   : > { %2710 = vmatpush3.msk.msra.mxu0 %vm1101_vm2, %v850_v3 }
 0x160   : > { %2873 = vmatprep.subr.bf16.mxu0 %v3096_v1 }
 0x1cd   : > { %v2693_v24 = vpop.f32.mrb[0].mxu1 }
 0x1ce   : > { %v937_v27 = vadd.f32 %v2693_v24, %v2535_v16  ;;  %v931_v29 = vpop.f32.mrb[1].mxu1 }
 0x1cf   : > { %v932_v30 = vadd.f32 %v2535_v16, %v931_v29  ;;  %v1200_v16 = vld [vmem:[%s3752_s16] sm:$0xff] }
 0x1d0   : > { %v941_v31 = vadd.f32 %v937_v27, %v842_v22 }
 0x1d1   : > { %v940_v32 = vadd.f32 %v932_v30, %v841_v28 }
 0x1d2   : > { %v943_v42 = vmax.f32 %v941_v31, 0.0 }
 0x1d3   : > { %v942_v43 = vmax.f32 %v940_v32, 0.0 }
 0x1d4   : > { %v945_v38 = vadd.f32 %v943_v42, %v3357_v45 }
 0x1d5   : > { %v944_v46 = vadd.f32 %v942_v43, %v3354_v41 }
 0x1d6   : > { %v949_v47 = vsel %vm858_vm12, %v945_v38, 0.0 }
 0x1d7   : > { %v946_v34 = vsel %vm858_vm12, %v944_v46, 0.0 }
 0x1d8   : > { %947 = vadd.xlane.f32.xlu1 %v946_v34  ;;  %v1202_v34 = vld [vmem:[%s3752_s16 + $0x10] sm:$0xff] }
 0x1dc   : > { %950 = vadd.xlane.f32.xlu1 %v949_v47  ;;  %v1204_v47 = vld [vmem:[%s3752_s16 + $0x20] sm:$0xff] }
 0x265   : > { %v948_v50 = vpop.xlane.xlu1 %947 }
 0x266   : > { %2992 = vrsqrt.f32 %v948_v50 }
 0x269   : > { %v951_v51 = vpop.xlane.xlu1 %950 }
 0x26a   : > { %2994 = vrsqrt.f32 %v951_v51 }
 0x270   : > { %v2993_v37 = vpop.eup %2992 }
 0x271   : > { %v954_v52 = vand.u32 2147483647, %v2993_v37 }
 0x273   : > { %vm956_vm15 = vcmp.eq.f32.partialorder %v954_v52, inf }
 0x274   : > { %v2995_v54 = vpop.eup %2994  ;;  %v958_v55 = vsel %vm956_vm15, 0.0, %v2993_v37 }
 0x275   : > { %v960_v56 = vmul.f32 %v958_v55, %v944_v46  ;;  %v955_v23 = vand.u32 2147483647, %v2995_v54  ;;  %v1201_v46 = vld [vmem:[%s3752_s16 + $0x8] sm:$0xff] }
 0x277   : > { %973 = vxpose.xlu1.b32.start [1/2] (short) (narrow) %v960_v56, 16  ;;  %vm957_vm0 = vcmp.eq.f32.partialorder %v955_v23, inf }
 0x278   : > { %v959_v57 = vsel %vm957_vm0, 0.0, %v2995_v54 }
 0x279   : > { %v961_v59 = vmul.f32 %v959_v57, %v945_v38  ;;  %v1203_v38 = vld [vmem:[%s3752_s16 + $0x18] sm:$0xff] }
 0x27b   : > { %974 = vxpose.xlu1.b32.end [2/2] (short) (narrow) %v961_v59, 16 }
 0x2f7   : > { %v989_v25 = vpop.trf.xlu1 }
 0x2f8   : > { %2698 = vmatprep.mubr.msk.f32.mxu1 %vm858_vm12, %v989_v25 }
 0x2fb   : > { %v990_v0 = vpop.trf.xlu1 }
 0x2fc   : > { %2699 = vmatmul.mubr.msk.f32.vlgmr.msra.gmra.mrb[2].mxu1 %vm858_vm12, %v990_v0 }
 0x2fd   : > { %2730 = vmatprep.mubr.msk.f32.mxu1 %vm1208_vm4, %v1200_v16 }
 0x3cf   : > { %v2700_v4 = vpop.f32.mrb[2].mxu1 }
 0x3d0   : > { %v1077_v5 = vpop.f32.mrb[3].mxu1  ;;  %v1087_v7 = vmul.f32 %v2700_v4, %v959_v57 }
 0x3d1   : > { %v1086_v6 = vmul.f32 %v1077_v5, %v958_v55 }
 0x3d3   : > { %2711 = vmatprep.mubr.msk.f32.mxu0 %vm1094_vm3, %v1086_v6 }
 0x3d4   : > { %2712 = vmatmul.mubr.msk.f32.vlgmr.msra.gmra.mrb[0].mxu0 %vm1094_vm3, %v1087_v7 }
 0x3d5   : > { %2758 = vmatprep.mubr.msk.f32.mxu0 %vm3097_vm5, %v3091_v33 }
 0x4a7   : > { %v2713_v10 = vpop.f32.mrb[0].mxu0 }
 0x4a8   : > { %v1177_v11 = vadd.f32 %v2713_v10, %v2540_v9  ;;  %v1171_v8 = vpop.f32.mrb[1].mxu0 }
 0x4a9   : > { %v1172_v13 = vadd.f32 %v2540_v9, %v1171_v8 }
 0x4ab   : > { %v2962_v14 = vpack.i.bf16 %v1177_v11, %v1172_v13  ;;  %v2857_v21 = vpack.c.bf16 %v1177_v11, %v1172_v13 }
 0x4ad   : > { %2963 = vrot.lane.b32.xlu0 %v2962_v14, %s3093_s20  ;;  %2858 = vmatprep.subr.bf16.mxu1 %v2857_v21 }
 0x4ae   : > { %2860 = vmatpush3.bf16.msra.mxu1 %v2857_v21 }
 0x4b1   : > { %2968 = vrot.lane.b32.xlu0 %v2962_v14, %s3094_s2 }
 0x4b5   : > { %2973 = vrot.lane.b32.xlu0 %v2962_v14, %s3095_s23  ;;  %s595_s23 = scalar_lea.vmem %s3754_s18, %s3204_s29 }
 0x51f   : > { %v2964_v20 = vpop.permute.xlu0 %2963 }
 0x520   : > { %v2966_v22 = vunpack.i.h.bf16 %v2964_v20  ;;  %v2965_v24 = vunpack.i.l.bf16 %v2964_v20 }
 0x522   : > { %v2861_v26 = vpack.c.bf16 %v2966_v22, %v2965_v24 }
 0x523   : > { %v2969_v27 = vpop.permute.xlu0 %2968 }
 0x524   : > { %v2971_v28 = vunpack.i.h.bf16 %v2969_v27  ;;  %v2970_v29 = vunpack.i.l.bf16 %v2969_v27  ;;  %2862 = vmatprep.subr.bf16.mxu1 %v2861_v26 }
 0x525   : > { %2864 = vmatpush3.bf16.msra.mxu1 %v2861_v26 }
 0x526   : > { %v2865_v30 = vpack.c.bf16 %v2971_v28, %v2970_v29 }
 0x527   : > { %v2974_v31 = vpop.permute.xlu0 %2973 }
 0x528   : > { %v2976_v32 = vunpack.i.h.bf16 %v2974_v31  ;;  %v2975_v42 = vunpack.i.l.bf16 %v2974_v31  ;;  %2866 = vmatprep.subr.bf16.mxu1 %v2865_v30 }
 0x529   : > { %2868 = vmatpush3.bf16.msra.mxu1 %v2865_v30 }
 0x52a   : > { %v2869_v43 = vpack.c.bf16 %v2976_v32, %v2975_v42 }
 0x52c   : > { %2870 = vmatprep.subr.bf16.mxu1 %v2869_v43 }
 0x52d   : > { %2872 = vmatpush3.bf16.msra.mxu1 %v2869_v43 }
 0x52e   : > { %2885 = vmatprep.subr.bf16.mxu1 %v3096_v1 }
 0x530   : > { %2731 = vmatmul.mubr.msk.f32.vlgmr.msra.gmra.mrb[4].mxu1 %vm1208_vm4, %v1201_v46 }
 0x531   : > { %2733 = vmatprep.mubr.msk.f32.mxu1 %vm1208_vm4, %v1202_v34 }
 0x534   : > { %2734 = vmatmul.mubr.msk.f32.gmra.mrb[6].mxu1 %vm1208_vm4, %v1203_v38 }
 0x535   : > { %2736 = vmatprep.mubr.msk.f32.mxu1 %vm1208_vm4, %v1204_v47 }
 0x538   : > { %2737 = vmatmul.mubr.msk.f32.gmra.mrb[8].mxu1 %vm1208_vm4, %v1205_v48 }
 0x539   : > { %2739 = vmatprep.mubr.msk.f32.mxu1 %vm1208_vm4, %v1206_v49 }
 0x53c   : > { %2740 = vmatmul.mubr.msk.f32.gmra.mrb[10].mxu1 %vm1208_vm4, %v1207_v44 }
 0x53d   : > { %2783 = vmatprep.mubr.msk.f32.mxu1 %vm3097_vm5, %v3091_v33 }
 0x603   : > { %v3432_v50 = vpop.f32.mrb[4].mxu1 }
 0x604   : > { %v3434_v51 = vpop.f32.mrb[5].mxu1  ;;  %v1341_v37 = vsel %vm858_vm12, %v3432_v50, 0.0  ;;  %v1374_v53 = vsel %vm858_vm12, %v3432_v50, -inf }
 0x605   : > { %1342 = vadd.xlane.f32.xlu0 %v1341_v37  ;;  %v1338_v40 = vsel %vm858_vm12, %v3434_v51, 0.0  ;;  %v1371_v57 = vsel %vm858_vm12, %v3434_v51, -inf }
 0x607   : > { %v3438_v52 = vpop.f32.mrb[6].mxu1 }
 0x608   : > { %v3442_v54 = vpop.f32.mrb[7].mxu1  ;;  %v1347_v59 = vsel %vm858_vm12, %v3438_v52, 0.0  ;;  %v1380_v60 = vsel %vm858_vm12, %v3438_v52, -inf }
 0x609   : > { %1375 = vmax.xlane.f32.xlu0 %v1374_v53  ;;  %v1344_v55 = vsel %vm858_vm12, %v3442_v54, 0.0  ;;  %v1377_v61 = vsel %vm858_vm12, %v3442_v54, -inf }
 0x60a   : > { %1345 = vadd.xlane.f32.xlu1 %v1344_v55 }
 0x60b   : > { %v3446_v36 = vpop.f32.mrb[8].mxu1 }
 0x60c   : > { %v3450_v56 = vpop.f32.mrb[9].mxu1  ;;  %v1353_v62 = vsel %vm858_vm12, %v3446_v36, 0.0  ;;  %v1386_v63 = vsel %vm858_vm12, %v3446_v36, -inf }
 0x60d   : > { %1339 = vadd.xlane.f32.xlu0 %v1338_v40  ;;  %v1350_v2 = vsel %vm858_vm12, %v3450_v56, 0.0  ;;  %v1383_v35 = vsel %vm858_vm12, %v3450_v56, -inf }
 0x60f   : > { %v3452_v23 = vpop.f32.mrb[10].mxu1 }
 0x610   : > { %v3456_v58 = vpop.f32.mrb[11].mxu1  ;;  %v1359_v25 = vsel %vm858_vm12, %v3452_v23, 0.0  ;;  %v1392_v3 = vsel %vm858_vm12, %v3452_v23, -inf }
 0x611   : > { %1372 = vmax.xlane.f32.xlu0 %v1371_v57  ;;  %v1389_v39 = vsel %vm858_vm12, %v3456_v58, -inf  ;;  %v1356_v0 = vsel %vm858_vm12, %v3456_v58, 0.0  ;;  %v1403_v57 = vld [vmem:[%s3749_s13] sm:$0xf] }
 0x612   : > { %1390 = vmax.xlane.f32.xlu1 %v1389_v39  ;;  %v1478_v39 = vld [vmem:[%s3750_s14] sm:$0xff] }
 0x615   : > { %1348 = vadd.xlane.f32.xlu0 %v1347_v59 }
 0x619   : > { %1381 = vmax.xlane.f32.xlu0 %v1380_v60 }
 0x61d   : > { %1378 = vmax.xlane.f32.xlu0 %v1377_v61 }
 0x621   : > { %1354 = vadd.xlane.f32.xlu0 %v1353_v62  ;;  %v1479_v62 = vld [vmem:[%s3750_s14 + $0x8] sm:$0xff] }
 0x625   : > { %1387 = vmax.xlane.f32.xlu0 %v1386_v63  ;;  %v1480_v63 = vld [vmem:[%s3750_s14 + $0x10] sm:$0xff] }
 0x629   : > { %1351 = vadd.xlane.f32.xlu0 %v1350_v2  ;;  %v1481_v2 = vld [vmem:[%s3750_s14 + $0x18] sm:$0xff] }
 0x62d   : > { %1384 = vmax.xlane.f32.xlu0 %v1383_v35  ;;  %v1482_v35 = vld [vmem:[%s3750_s14 + $0x20] sm:$0xff] }
 0x631   : > { %1360 = vadd.xlane.f32.xlu0 %v1359_v25  ;;  %v1483_v25 = vld [vmem:[%s3750_s14 + $0x28] sm:$0xff] }
 0x635   : > { %1357 = vadd.xlane.f32.xlu0 %v1356_v0  ;;  %v1484_v0 = vld [vmem:[%s3750_s14 + $0x30] sm:$0xff] }
 0x639   : > { %1393 = vmax.xlane.f32.xlu0 %v1392_v3  ;;  %v1485_v3 = vld [vmem:[%s3750_s14 + $0x38] sm:$0xff] }
 0x692   : > { %v1343_v4 = vpop.xlane.xlu0 %1342 }
 0x693   : > { %v1364_v7 = vmul.f32 0.0625, %v1343_v4 }
 0x696   : > { %v1376_v5 = vpop.xlane.xlu0 %1375 }
 0x697   : > { %v1396_v11 = vsel %vm970_vm1, %v1364_v7, %v1376_v5  ;;  %v1346_v21 = vpop.xlane.xlu1 %1345 }
 0x698   : > { %v1365_v22 = vmul.f32 0.0625, %v1346_v21 }
 0x69a   : > { %v1340_v6 = vpop.xlane.xlu0 %1339 }
 0x69b   : > { %v1363_v9 = vmul.f32 0.0625, %v1340_v6 }
 0x69e   : > { %v1373_v10 = vpop.xlane.xlu0 %1372 }
 0x69f   : > { %v1395_v8 = vsel %vm970_vm1, %v1363_v9, %v1373_v10  ;;  %v1391_v44 = vpop.xlane.xlu1 %1390 }
 0x6a0   : > { %v2874_v13 = vpack.c.bf16 %v1396_v11, %v1395_v8 }
 0x6a2   : > { %2875 = vmatpush3.bf16.msra.mxu0 %v2874_v13  ;;  %v1349_v14 = vpop.xlane.xlu0 %1348  ;;  %v3099_v13 = vmov 0  }
 0x6a3   : > { %2876 = vmatprep.subr.bf16.mxu0 %v3096_v1  ;;  %v1366_v20 = vmul.f32 0.0625, %v1349_v14  ;;  %2977 = vset.pattern.permute.xlu1 %v3099_v13 }
 0x6a4   : > { %2978 = vset.pattern.permute.xlu0 %v3099_v13 }
 0x6a6   : > { %v1382_v16 = vpop.xlane.xlu0 %1381 }
 0x6a7   : > { %v1398_v24 = vsel %vm970_vm1, %v1366_v20, %v1382_v16 }
 0x6aa   : > { %v1379_v33 = vpop.xlane.xlu0 %1378 }
 0x6ab   : > { %v1397_v26 = vsel %vm970_vm1, %v1365_v22, %v1379_v33 }
 0x6ac   : > { %v2877_v27 = vpack.c.bf16 %v1398_v24, %v1397_v26 }
 0x6ae   : > { %2878 = vmatpush3.bf16.msra.mxu0 %v2877_v27  ;;  %v1355_v28 = vpop.xlane.xlu0 %1354 }
 0x6af   : > { %2879 = vmatprep.subr.bf16.mxu0 %v3096_v1  ;;  %v1368_v31 = vmul.f32 0.0625, %v1355_v28 }
 0x6b2   : > { %v1388_v29 = vpop.xlane.xlu0 %1387 }
 0x6b3   : > { %v1400_v43 = vsel %vm970_vm1, %v1368_v31, %v1388_v29 }
 0x6b6   : > { %v1352_v30 = vpop.xlane.xlu0 %1351 }
 0x6b7   : > { %v1367_v32 = vmul.f32 0.0625, %v1352_v30 }
 0x6ba   : > { %v1385_v42 = vpop.xlane.xlu0 %1384 }
 0x6bb   : > { %v1399_v46 = vsel %vm970_vm1, %v1367_v32, %v1385_v42 }
 0x6bc   : > { %v2880_v34 = vpack.c.bf16 %v1400_v43, %v1399_v46 }
 0x6be   : > { %2881 = vmatpush3.bf16.msra.mxu0 %v2880_v34  ;;  %v1361_v38 = vpop.xlane.xlu0 %1360 }
 0x6bf   : > { %2882 = vmatprep.subr.bf16.mxu0 %v3096_v1  ;;  %v1370_v49 = vmul.f32 0.0625, %v1361_v38 }
 0x6c2   : > { %v1358_v47 = vpop.xlane.xlu0 %1357 }
 0x6c3   : > { %v1369_v48 = vmul.f32 0.0625, %v1358_v47 }
 0x6c5   : > { %v1401_v53 = vsel %vm970_vm1, %v1369_v48, %v1391_v44 }
 0x6c6   : > { %v1394_v37 = vpop.xlane.xlu0 %1393 }
 0x6c7   : > { %v1402_v55 = vsel %vm970_vm1, %v1370_v49, %v1394_v37 }
 0x6c8   : > { %v2883_v40 = vpack.c.bf16 %v1402_v55, %v1401_v53 }
 0x6ca   : > { %2884 = vmatpush3.bf16.msra.mxu0 %v2883_v40 }
 0x6cd   : > { %2759 = vmatmul.mubr.msk.f32.vlgmr.msra.gmra.mrb[2].mxu0 %vm1208_vm4, %v1403_v57 }
 0x6ce   : > { %2763 = vmatprep.mubr.msk.f32.mxu0 %vm1486_vm6, %v1478_v39 }
 0x7a0   : > { %v1473_v59 = vpop.f32.mrb[2].mxu0 }
 0x7a1   : > { %v1477_v60 = vmax.f32 %v1473_v59, 0.0  ;;  %v2760_v61 = vpop.f32.mrb[3].mxu0 }
 0x7a3   : > { %2761 = vmatprep.subr.msk.mxu0 %vm1511_vm7, %v1477_v60 }
 0x7a4   : > { %2762 = vmatpush3.msk.msra.mxu0 %vm1511_vm7, %v1477_v60 }
 0x7a5   : > { %2764 = vmatmul.mubr.msk.f32.vlgmr.msra.gmra.mrb[4].mxu0 %vm1486_vm6, %v1479_v62 }
 0x7a6   : > { %2766 = vmatprep.mubr.msk.f32.mxu0 %vm1486_vm6, %v1480_v63 }
 0x7a9   : > { %2767 = vmatmul.mubr.msk.f32.gmra.mrb[6].mxu0 %vm1486_vm6, %v1481_v2 }
 0x7aa   : > { %2769 = vmatprep.mubr.msk.f32.mxu0 %vm1486_vm6, %v1482_v35 }
 0x7ad   : > { %2770 = vmatmul.mubr.msk.f32.gmra.mrb[8].mxu0 %vm1486_vm6, %v1483_v25 }
 0x7ae   : > { %2772 = vmatprep.mubr.msk.f32.mxu0 %vm1486_vm6, %v1484_v0 }
 0x7b1   : > { %2773 = vmatmul.mubr.msk.f32.gmra.mrb[10].mxu0 %vm1486_vm6, %v1485_v3 }
 0x878   : > { %v2765_v4 = vpop.f32.mrb[4].mxu0 }
 0x879   : > { %1630 = vrot.lane.b32.xlu0 %v2765_v4, %s3098_s21  ;;  %v1581_v5 = vpop.f32.mrb[5].mxu0 }
 0x87a   : > { %1628 = vrot.lane.b32.xlu1 %v1581_v5, %s3098_s21 }
 0x87c   : > { %v2768_v6 = vpop.f32.mrb[6].mxu0 }
 0x87d   : > { %v1591_v7 = vpop.f32.mrb[7].mxu0 }
 0x87e   : > { %1634 = vrot.lane.b32.xlu1 %v2768_v6, %s3098_s21 }
 0x880   : > { %v2771_v9 = vpop.f32.mrb[8].mxu0 }
 0x881   : > { %v1601_v10 = vpop.f32.mrb[9].mxu0 }
 0x882   : > { %1632 = vrot.lane.b32.xlu1 %v1591_v7, %s3098_s21  ;;  %1636 = vrot.lane.b32.xlu0 %v1601_v10, %s3098_s21 }
 0x884   : > { %v2774_v11 = vpop.f32.mrb[10].mxu0 }
 0x885   : > { %v1611_v8 = vpop.f32.mrb[11].mxu0 }
 0x886   : > { %1638 = vrot.lane.b32.xlu1 %v2771_v9, %s3098_s21  ;;  %1640 = vrot.lane.b32.xlu0 %v1611_v8, %s3098_s21 }
 0x88a   : > { %1642 = vrot.lane.b32.xlu1 %v2774_v11, %s3098_s21 }
 0x8eb   : > { %v1631_v14 = vpop.permute.xlu0 %1630 }
 0x8ec   : > { %v1653_v21 = vadd.f32 %v2765_v4, %v1631_v14  ;;  %v1629_v16 = vpop.permute.xlu1 %1628  ;;  %v1805_v14 = vld [vmem:[%s3751_s15] sm:$0xff] }
 0x8ed   : > { %v1652_v20 = vadd.f32 %v1629_v16, %v1581_v5  ;;  %v1807_v16 = vld [vmem:[%s3751_s15 + $0x10] sm:$0xff] }
 0x8ee   : > { %v2563_v22 = vmul.f32 -1.442695, %v1653_v21  ;;  %v1806_v21 = vld [vmem:[%s3751_s15 + $0x8] sm:$0xff] }
 0x8ef   : > { %v2562_v33 = vmul.f32 -1.442695, %v1652_v20  ;;  %v2886_v20 = vpack.c.bf16 %v1806_v21, %v1805_v14 }
 0x8f0   : > { %2996 = vpow2.f32 %v2563_v22  ;;  %v1635_v24 = vpop.permute.xlu1 %1634  ;;  %v1808_v22 = vld [vmem:[%s3751_s15 + $0x18] sm:$0xff] }
 0x8f1   : > { %2998 = vpow2.f32 %v2562_v33  ;;  %v1655_v26 = vadd.f32 %v2768_v6, %v1635_v24  ;;  %2887 = vmatpush3.bf16.msra.mxu1 %v2886_v20  ;;  %v2889_v33 = vpack.c.bf16 %v1808_v22, %v1807_v16 }
 0x8f2   : > { %2888 = vmatprep.subr.bf16.mxu1 %v3096_v1 }
 0x8f3   : > { %v2565_v27 = vmul.f32 -1.442695, %v1655_v26 }
 0x8f4   : > { %v1633_v28 = vpop.permute.xlu1 %1632  ;;  %v1637_v29 = vpop.permute.xlu0 %1636 }
 0x8f5   : > { %3000 = vpow2.f32 %v2565_v27  ;;  %v1654_v30 = vadd.f32 %v1633_v28, %v1591_v7  ;;  %v1656_v31 = vadd.f32 %v1637_v29, %v1601_v10  ;;  %2890 = vmatpush3.bf16.msra.mxu1 %v2889_v33 }
 0x8f7   : > { %v2564_v32 = vmul.f32 -1.442695, %v1654_v30  ;;  %v2566_v42 = vmul.f32 -1.442695, %v1656_v31 }
 0x8f8   : > { %v1639_v43 = vpop.permute.xlu1 %1638  ;;  %v1641_v46 = vpop.permute.xlu0 %1640 }
 0x8f9   : > { %3002 = vpow2.f32 %v2564_v32  ;;  %v1657_v34 = vadd.f32 %v2771_v9, %v1639_v43  ;;  %v1658_v38 = vadd.f32 %v1641_v46, %v1611_v8 }
 0x8fa   : > { %v2997_v47 = vpop.eup %2996  ;;  %3004 = vpow2.f32 %v2566_v42 }
 0x8fb   : > { %v2999_v48 = vpop.eup %2998  ;;  %v1685_v49 = vadd.f32 1.0, %v2997_v47  ;;  %v2567_v44 = vmul.f32 -1.442695, %v1657_v34  ;;  %v2568_v53 = vmul.f32 -1.442695, %v1658_v38 }
 0x8fc   : > { %v1684_v37 = vadd.f32 1.0, %v2999_v48  ;;  %v1643_v55 = vpop.permute.xlu1 %1642 }
 0x8fd   : > { %3006 = vrcp.f32 %v1685_v49  ;;  %v1659_v40 = vadd.f32 %v2774_v11, %v1643_v55 }
 0x8fe   : > { %3008 = vrcp.f32 %v1684_v37 }
 0x8ff   : > { %v3001_v57 = vpop.eup %3000  ;;  %3010 = vpow2.f32 %v2567_v44  ;;  %v2569_v39 = vmul.f32 -1.442695, %v1659_v40 }
 0x900   : > { %v1687_v59 = vadd.f32 1.0, %v3001_v57  ;;  %3012 = vpow2.f32 %v2568_v53 }
 0x901   : > { %3014 = vpow2.f32 %v2569_v39 }
 0x902   : > { %3016 = vrcp.f32 %v1687_v59 }
 0x903   : > { %v3003_v60 = vpop.eup %3002 }
 0x904   : > { %v3005_v61 = vpop.eup %3004  ;;  %v1686_v62 = vadd.f32 1.0, %v3003_v60  ;;  %v2110_v60 = vld [vmem:[%s3745_s9] sm:$0xff] }
 0x905   : > { %v1688_v63 = vadd.f32 1.0, %v3005_v61 }
 0x906   : > { %3018 = vrcp.f32 %v1686_v62 }
 0x907   : > { %v3007_v2 = vpop.eup %3006  ;;  %3020 = vrcp.f32 %v1688_v63 }
 0x908   : > { %v3009_v35 = vpop.eup %3008  ;;  %1715 = vperm.xlu1 %2977, %v3007_v2  }
 0x909   : > { %v3011_v25 = vpop.eup %3010  ;;  %1710 = vperm.xlu0 %2978, %v3009_v35  }
 0x90a   : > { %v3013_v0 = vpop.eup %3012  ;;  %v1689_v3 = vadd.f32 1.0, %v3011_v25 }
 0x90b   : > { %v3015_v4 = vpop.eup %3014  ;;  %v1690_v5 = vadd.f32 1.0, %v3013_v0 }
 0x90c   : > { %v3017_v6 = vpop.eup %3016  ;;  %3022 = vrcp.f32 %v1689_v3  ;;  %v1691_v7 = vadd.f32 1.0, %v3015_v4 }
 0x90d   : > { %3024 = vrcp.f32 %v1690_v5  ;;  %1725 = vperm.xlu0 %2978, %v3017_v6  }
 0x90e   : > { %3026 = vrcp.f32 %v1691_v7 }
 0x910   : > { %v3019_v9 = vpop.eup %3018 }
 0x911   : > { %1720 = vperm.xlu1 %2977, %v3019_v9   ;;  %v3021_v10 = vpop.eup %3020 }
 0x915   : > { %1730 = vperm.xlu1 %2977, %v3021_v10  }
 0x916   : > { %v3023_v11 = vpop.eup %3022 }
 0x917   : > { %v3025_v8 = vpop.eup %3024  ;;  %1735 = vperm.xlu0 %2978, %v3023_v11  }
 0x918   : > { %v3027_v13 = vpop.eup %3026 }
 0x919   : > { %1740 = vperm.xlu1 %2977, %v3025_v8  }
 0x91b   : > { %1745 = vperm.xlu0 %2978, %v3027_v13  }
 0x987   : > { %v1716_v24 = vpop.permute.xlu1 %1715 }
 0x988   : > { %v1711_v26 = vpop.permute.xlu0 %1710  ;;  %v3548_v31 = vmul.f32 %v3432_v50, %v1716_v24 }
 0x989   : > { %v3551_v42 = vmul.f32 %v1711_v26, %v3434_v51 }
 0x98a   : > { %v1780_v51 = vsel %vm858_vm12, %v3548_v31, -inf  ;;  %v1757_v0 = vsel %vm858_vm12, %v3548_v31, 0.0 }
 0x98b   : > { %v1756_v3 = vsel %vm858_vm12, %v3551_v42, 0.0 }
 0x98c   : > { %v1726_v28 = vpop.permute.xlu0 %1725  ;;  %v1758_v5 = vadd.f32 %v1757_v0, %v1756_v3 }
 0x98d   : > { %v3560_v34 = vmul.f32 %v3438_v52, %v1726_v28 }
 0x98f   : > { %v1782_v37 = vsel %vm858_vm12, %v3560_v34, -inf  ;;  %v1761_v7 = vsel %vm858_vm12, %v3560_v34, 0.0 }
 0x990   : > { %v1721_v27 = vpop.permute.xlu1 %1720 }
 0x991   : > { %v3554_v43 = vmul.f32 %v1721_v27, %v3442_v54 }
 0x993   : > { %v1781_v52 = vsel %vm858_vm12, %v3554_v43, -inf  ;;  %v1759_v4 = vsel %vm858_vm12, %v3554_v43, 0.0 }
 0x994   : > { %v1731_v29 = vpop.permute.xlu1 %1730  ;;  %v1760_v6 = vadd.f32 %v1759_v4, %v1758_v5 }
 0x995   : > { %v3545_v30 = vmul.f32 %v1731_v29, %v3450_v56 }
 0x996   : > { %v1736_v32 = vpop.permute.xlu0 %1735  ;;  %v1762_v9 = vadd.f32 %v1761_v7, %v1760_v6 }
 0x997   : > { %v3557_v1 = vmul.f32 %v3446_v36, %v1736_v32  ;;  %v1783_v56 = vsel %vm858_vm12, %v3545_v30, -inf  ;;  %v1779_v36 = vsel %vm858_vm12, %v3551_v42, -inf  ;;  %v1763_v10 = vsel %vm858_vm12, %v3545_v30, 0.0 }
 0x998   : > { %v1741_v46 = vpop.permute.xlu1 %1740  ;;  %v1784_v49 = vmax.f32 %v1779_v36, %v1783_v56  ;;  %v1764_v11 = vadd.f32 %v1763_v10, %v1762_v9  ;;  %v1949_v56 = vld [vmem:[%s3753_s17] sm:$0xff] }
 0x999   : > { %v1785_v50 = vsel %vm858_vm12, %v3557_v1, -inf  ;;  %v3567_v38 = vmul.f32 %v1741_v46, %v3456_v58  ;;  %v1765_v8 = vsel %vm858_vm12, %v3557_v1, 0.0  ;;  %2802 = vmatprep.mubr.msk.f32.mxu0 %vm1208_vm4, %v1949_v56  ;;  %v2588_v36 = vld [vmem:[%s3746_s10] ss:$0 sm:$0xff]  ;;  %v1950_v56 = vld [vmem:[%s3753_s17 + $0x8] sm:$0xff] }
 0x99a   : > { %v1746_v54 = vpop.permute.xlu0 %1745  ;;  %v1786_v44 = vmax.f32 %v1780_v51, %v1785_v50  ;;  %v1766_v13 = vadd.f32 %v1765_v8, %v1764_v11 }
 0x99b   : > { %v1787_v47 = vsel %vm858_vm12, %v3567_v38, -inf  ;;  %v3578_v48 = vmul.f32 %v3452_v23, %v1746_v54  ;;  %v2111_v23 = vld [vmem:[%s3745_s9 + $0x8] sm:$0xff]  ;;  %v1767_v14 = vsel %vm858_vm12, %v3567_v38, 0.0 }
 0x99c   : > { %v1788_v58 = vmax.f32 %v1781_v52, %v1787_v47  ;;  %v1791_v40 = vmax.f32 %v1784_v49, %v1786_v44  ;;  %v2907_v61 = vpack.c.bf16 %v2111_v23, %v2110_v60  ;;  %v1768_v21 = vadd.f32 %v1767_v14, %v1766_v13 }
 0x99d   : > { %v1789_v53 = vsel %vm858_vm12, %v3578_v48, -inf  ;;  %v1769_v16 = vsel %vm858_vm12, %v3578_v48, 0.0 }
 0x99e   : > { %v1790_v55 = vmax.f32 %v1782_v37, %v1789_v53  ;;  %2908 = vmatprep.subr.bf16.mxu1 %v2907_v61  ;;  %v1770_v20 = vadd.f32 %v1769_v16, %v1768_v21 }
 0x9a0   : > { %v1792_v57 = vmax.f32 %v1788_v58, %v1790_v55  ;;  %v1771_v22 = vrot.slane %v1770_v20, 4  ;;  %v1891_v55 = vsub.s32 0, %v3340_v19 }
 0x9a2   : > { %v1793_v39 = vmax.f32 %v1791_v40, %v1792_v57  ;;  %v1772_v33 = vadd.f32 %v1771_v22, %v1770_v20 }
 0x9a4   : > { %v1794_v59 = vrot.slane %v1793_v39, 4  ;;  %v1773_v24 = vrot.slane %v1772_v33, 2 }
 0x9a6   : > { %v1795_v62 = vmax.f32 %v1793_v39, %v1794_v59  ;;  %v1774_v26 = vadd.f32 %v1773_v24, %v1772_v33 }
 0x9a8   : > { %v1796_v63 = vrot.slane %v1795_v62, 2  ;;  %v1775_v27 = vrot.slane %v1774_v26, 1 }
 0x9aa   : > { %v1797_v2 = vmax.f32 %v1795_v62, %v1796_v63  ;;  %v1776_v28 = vadd.f32 %v1775_v27, %v1774_v26 }
 0x9ac   : > { %v1798_v35 = vrot.slane %v1797_v2, 1  ;;  %v1778_v29 = vmul.f32 0.015625, %v1776_v28 }
 0x9ae   : > { %v1799_v25 = vmax.f32 %v1797_v2, %v1798_v35 }
 0x9b0   : > { %1801 = vrot.lane.b32.xlu1 %v1799_v25, %s3100_s24 }
 0xa22   : > { %v1802_v32 = vpop.permute.xlu1 %1801 }
 0xa23   : > { %v1804_v46 = vsel %vm858_vm12, %v1778_v29, %v1802_v32 }
 0xa24   : > { %2784 = vmatmul.mubr.msk.f32.vlgmr.msra.gmra.mrb[12].mxu1 %vm1809_vm8, %v1804_v46 }
 0xa25   : > { %2910 = vmatpush3.bf16.msra.mxu1 %v2907_v61  ;;  %2818 = vmatprep.mubr.msk.f32.mxu1 %vm858_vm12, %v839_v18 }
 0xa28   : > { %2819 = vmatmul.mubr.msk.f32.vlgmr.msra.gmra.mrb[14].mxu1 %vm858_vm12, %v840_v17 }
 0xaf7   : > { %v1879_v50 = vpop.f32.mrb[12].mxu1 }
 0xaf8   : > { %v2571_v51 = vmul.f32 -1.442695, %v1879_v50  ;;  %v2785_v54 = vpop.f32.mrb[13].mxu1  ;;  %v1951_v50 = vld [vmem:[%s3753_s17 + $0x10] sm:$0xff] }
 0xafa   : > { %3028 = vpow2.f32 %v2571_v51  ;;  %v1952_v51 = vld [vmem:[%s3753_s17 + $0x18] sm:$0xff] }
 0xafb   : > { %v2820_v15 = vpop.f32.mrb[14].mxu1 }
 0xafc   : > { %v3622_v18 = vadd.f32 %v2820_v15, %v2588_v36  ;;  %v2191_v17 = vpop.f32.mrb[15].mxu1 }
 0xafd   : > { %v2192_v52 = vadd.f32 %v2588_v36, %v2191_v17  ;;  %v2109_v17 = vld [vmem:[%s3744_s8 + $0x8] sm:$0xff] }
 0xaff   : > { %v2200_v47 = vadd.f32 %v2192_v52, %v2108_v12  ;;  %v2201_v52 = vadd.f32 %v3622_v18, %v2109_v17 }
 0xb01   : > { %v2202_v49 = vmax.f32 %v2200_v47, 0.0  ;;  %v2203_v47 = vmax.f32 %v2201_v52, 0.0 }
 0xb03   : > { %v3628_v44 = vadd.f32 %v2202_v49, %v3354_v41  ;;  %v2205_v49 = vadd.f32 %v2203_v47, %v3357_v45  ;;  %v1953_v45 = vld [vmem:[%s3753_s17 + $0x20] sm:$0xff] }
 0xb04   : > { %v3029_v58 = vpop.eup %3028 }
 0xb05   : > { %v1886_v37 = vadd.f32 1.0, %v3029_v58  ;;  %v2206_v53 = vsel %vm858_vm12, %v3628_v44, 0.0  ;;  %v2209_v58 = vsel %vm858_vm12, %v2205_v49, 0.0 }
 0xb06   : > { %2207 = vadd.xlane.f32.xlu0 %v2206_v53 }
 0xb07   : > { %3030 = vrcp.f32 %v1886_v37 }
 0xb11   : > { %v3031_v40 = vpop.eup %3030 }
 0xb12   : > { %v1892_v57 = vrot.slane %v3031_v40, %v1891_v55 }
 0xb14   : > { %v1893_v39 = vmul.f32 %v1892_v57, %v3551_v42  ;;  %v1894_v59 = vmul.f32 %v1892_v57, %v3548_v31  ;;  %v1895_v60 = vmul.f32 %v1892_v57, %v3554_v43  ;;  %v1896_v41 = vmul.f32 %v1892_v57, %v3560_v34 }
 0xb15   : > { %v1897_v23 = vmul.f32 %v1892_v57, %v3545_v30  ;;  %v1898_v61 = vmul.f32 %v1892_v57, %v3557_v1  ;;  %v1899_v35 = vmul.f32 %v1892_v57, %v3567_v38  ;;  %v1900_v25 = vmul.f32 %v1892_v57, %v3578_v48 }
 0xb16   : > { %v2572_v62 = vmul.f32 -1.442695, %v1893_v39  ;;  %v2573_v63 = vmul.f32 -1.442695, %v1894_v59  ;;  %v2574_v2 = vmul.f32 -1.442695, %v1895_v60 }
 0xb17   : > { %v2575_v19 = vmul.f32 -1.442695, %v1896_v41  ;;  %v2576_v42 = vmul.f32 -1.442695, %v1897_v23  ;;  %v2577_v31 = vmul.f32 -1.442695, %v1898_v61 }
 0xb18   : > { %3032 = vpow2.f32 %v2572_v62  ;;  %v2578_v43 = vmul.f32 -1.442695, %v1899_v35  ;;  %v2579_v34 = vmul.f32 -1.442695, %v1900_v25  ;;  %v1954_v59 = vld [vmem:[%s3753_s17 + $0x28] sm:$0xff]  ;;  %v1955_v60 = vld [vmem:[%s3753_s17 + $0x30] sm:$0xff] }
 0xb19   : > { %3034 = vpow2.f32 %v2573_v63  ;;  %v3679_v23 = vld [vmem:[%s3367_s26 + $0x8] sm:$0xff]  ;;  %v3683_v62 = vld [vmem:[%s3367_s26] sm:$0xff] }
 0xb1a   : > { %3036 = vpow2.f32 %v2574_v2  ;;  %v1956_v2 = vld [vmem:[%s3753_s17 + $0x38] sm:$0xff] }
 0xb1b   : > { %3038 = vpow2.f32 %v2575_v19 }
 0xb1c   : > { %3040 = vpow2.f32 %v2576_v42 }
 0xb1d   : > { %3042 = vpow2.f32 %v2577_v31 }
 0xb1e   : > { %3044 = vpow2.f32 %v2578_v43 }
 0xb1f   : > { %3046 = vpow2.f32 %v2579_v34 }
 0xb22   : > { %v3033_v30 = vpop.eup %3032 }
 0xb23   : > { %v3035_v1 = vpop.eup %3034  ;;  %v1925_v0 = vadd.f32 1.0, %v3033_v30 }
 0xb24   : > { %v3037_v3 = vpop.eup %3036  ;;  %v1926_v38 = vadd.f32 1.0, %v3035_v1 }
 0xb25   : > { %v3039_v4 = vpop.eup %3038  ;;  %3048 = vrcp.f32 %v1925_v0  ;;  %v1927_v48 = vadd.f32 1.0, %v3037_v3  ;;  %v2113_v0 = vld [vmem:[%s3747_s11] sm:$0xff]  ;;  %v2114_v3 = vld [vmem:[%s3747_s11 + $0x8] sm:$0xff] }
 0xb26   : > { %v3041_v5 = vpop.eup %3040  ;;  %3050 = vrcp.f32 %v1926_v38  ;;  %v1928_v6 = vadd.f32 1.0, %v3039_v4  ;;  %v3074_v38 = vld [vmem:[%s3210_s1] sm:$0xff] }
 0xb27   : > { %v3043_v7 = vpop.eup %3042  ;;  %3052 = vrcp.f32 %v1927_v48  ;;  %v1929_v9 = vadd.f32 1.0, %v3041_v5  ;;  %v3075_v48 = vld [vmem:[%s3210_s1 + $0x8] sm:$0xff] }
 0xb28   : > { %v3045_v10 = vpop.eup %3044  ;;  %3054 = vrcp.f32 %v1928_v6  ;;  %v1930_v11 = vadd.f32 1.0, %v3043_v7  ;;  %v2915_v7 = vpack.c.bf16 %v2114_v3, %v2113_v0 }
 0xb29   : > { %v3047_v8 = vpop.eup %3046  ;;  %3056 = vrcp.f32 %v1929_v9  ;;  %v1931_v13 = vadd.f32 1.0, %v3045_v10  ;;  %v2115_v10 = vld [vmem:[%s3747_s11 + $0x10] sm:$0xff] }
 0xb2a   : > { %3058 = vrcp.f32 %v1930_v11  ;;  %v1932_v14 = vadd.f32 1.0, %v3047_v8  ;;  %v2116_v11 = vld [vmem:[%s3747_s11 + $0x18] sm:$0xff] }
 0xb2b   : > { %3060 = vrcp.f32 %v1931_v13  ;;  %v2919_v8 = vpack.c.bf16 %v2116_v11, %v2115_v10 }
 0xb2c   : > { %3062 = vrcp.f32 %v1932_v14 }
 0xb2f   : > { %v3049_v21 = vpop.eup %3048 }
 0xb30   : > { %v3051_v16 = vpop.eup %3050 }
 0xb31   : > { %v3053_v20 = vpop.eup %3052  ;;  %v2891_v22 = vpack.c.bf16 %v3051_v16, %v3049_v21 }
 0xb32   : > { %v3055_v33 = vpop.eup %3054 }
 0xb33   : > { %v3057_v24 = vpop.eup %3056  ;;  %2892 = vmatprep.subr.bf16.mxu0 %v2891_v22  ;;  %v2895_v26 = vpack.c.bf16 %v3055_v33, %v3053_v20 }
 0xb34   : > { %v3059_v27 = vpop.eup %3058  ;;  %2894 = vmatpush3.bf16.msra.mxu0 %v2891_v22  ;;  %v2117_v22 = vld [vmem:[%s3747_s11 + $0x20] sm:$0x1] }
 0xb35   : > { %2896 = vmatprep.subr.bf16.mxu0 %v2895_v26  ;;  %v3061_v28 = vpop.eup %3060  ;;  %v2899_v29 = vpack.c.bf16 %v3059_v27, %v3057_v24 }
 0xb36   : > { %v3063_v32 = vpop.eup %3062 }
 0xb37   : > { %v2903_v46 = vpack.c.bf16 %v3063_v32, %v3061_v28  ;;  %v2593_v28 = vld [vmem:[%s3748_s12] ss:$0 sm:$0xff] }
 0xb38   : > { %2898 = vmatpush3.bf16.msra.mxu0 %v2895_v26 }
 0xb39   : > { %2900 = vmatprep.subr.bf16.mxu0 %v2899_v29 }
 0xb3c   : > { %2902 = vmatpush3.bf16.msra.mxu0 %v2899_v29 }
 0xb3d   : > { %2904 = vmatprep.subr.bf16.mxu0 %v2903_v46 }
 0xb40   : > { %2906 = vmatpush3.bf16.msra.mxu0 %v2903_v46 }
 0xb43   : > { %2803 = vmatmul.mubr.msk.f32.vlgmr.msra.gmra.mrb[12].mxu0 %vm1208_vm4, %v1950_v56 }
 0xb44   : > { %2805 = vmatprep.mubr.msk.f32.mxu0 %vm1208_vm4, %v1951_v50 }
 0xb47   : > { %2806 = vmatmul.mubr.msk.f32.gmra.mrb[14].mxu0 %vm1208_vm4, %v1952_v51 }
 0xb48   : > { %2808 = vmatprep.mubr.msk.f32.mxu0 %vm1208_vm4, %v1953_v45 }
 0xb4b   : > { %2809 = vmatmul.mubr.msk.f32.gmra.mrb[16].mxu0 %vm1208_vm4, %v1954_v59 }
 0xb4c   : > { %2811 = vmatprep.mubr.msk.f32.mxu0 %vm1208_vm4, %v1955_v60 }
 0xb4f   : > { %2812 = vmatmul.mubr.msk.f32.gmra.mrb[18].mxu0 %vm1208_vm4, %v1956_v2 }
 0xb93   : > { %v2208_v37 = vpop.xlane.xlu0 %2207 }
 0xb94   : > { %3064 = vrsqrt.f32 %v2208_v37 }
 0xb9e   : > { %v3065_v53 = vpop.eup %3064 }
 0xb9f   : > { %v2214_v55 = vand.u32 2147483647, %v3065_v53 }
 0xba1   : > { %vm2216_vm9 = vcmp.eq.f32.partialorder %v2214_v55, inf }
 0xba2   : > { %v3661_v40 = vsel %vm2216_vm9, 0.0, %v3065_v53 }
 0xba3   : > { %v2220_v57 = vmul.f32 %v3661_v40, %v3628_v44 }
 0xc16   : > { %v2804_v54 = vpop.f32.mrb[12].mxu0 }
 0xc17   : > { %v2047_v36 = vpop.f32.mrb[13].mxu0 }
 0xc1a   : > { %v2807_v15 = vpop.f32.mrb[14].mxu0 }
 0xc1b   : > { %2090 = vrot.lane.b32.xlu1 %v2807_v15, %s3100_s24  ;;  %v2057_v12 = vpop.f32.mrb[15].mxu0 }
 0xc1e   : > { %v2810_v14 = vpop.f32.mrb[16].mxu0 }
 0xc1f   : > { %2088 = vrot.lane.b32.xlu1 %v2057_v12, %s3100_s24  ;;  %v2067_v21 = vpop.f32.mrb[17].mxu0 }
 0xc22   : > { %v2813_v16 = vpop.f32.mrb[18].mxu0 }
 0xc23   : > { %v2077_v20 = vpop.f32.mrb[19].mxu0 }
 0xc43   : > { %2210 = vadd.xlane.f32.xlu1 %v2209_v58 }
 0xc76   : > { %2232 = vxpose.xlu1.b32.start [1/2] (short) (narrow) %v2220_v57, 16 }
 0xc8d   : > { %v2091_v18 = vpop.permute.xlu1 %2090 }
 0xc8e   : > { %v2095_v39 = vsel %vm858_vm12, %v2804_v54, %v2091_v18 }
 0xc8f   : > { %v2107_v61 = vmul.f32 %v3679_v23, %v2095_v39 }
 0xc91   : > { %v2089_v41 = vpop.permute.xlu1 %2088 }
 0xc92   : > { %v2094_v44 = vsel %vm858_vm12, %v2047_v36, %v2089_v41 }
 0xc93   : > { %v2106_v63 = vmul.f32 %v3683_v62, %v2094_v44 }
 0xc95   : > { %v2979_v35 = vpack.i.bf16 %v2107_v61, %v2106_v63 }
 0xc97   : > { %2980 = vrot.lane.b32.xlu0 %v2979_v35, %s3092_s28 }
 0xc9b   : > { %2098 = vrot.lane.b32.xlu0 %v2077_v20, %s3100_s24 }
 0xc9f   : > { %2100 = vrot.lane.b32.xlu0 %v2813_v16, %s3100_s24 }
 0xcd0   : > { %v2211_v19 = vpop.xlane.xlu1 %2210 }
 0xcd1   : > { %3066 = vrsqrt.f32 %v2211_v19 }
 0xcdb   : > { %v3067_v25 = vpop.eup %3066 }
 0xcdc   : > { %v2215_v42 = vand.u32 2147483647, %v3067_v25 }
 0xcde   : > { %vm2217_vm10 = vcmp.eq.f32.partialorder %v2215_v42, inf }
 0xcdf   : > { %v2219_v31 = vsel %vm2217_vm10, 0.0, %v3067_v25 }
 0xce0   : > { %v2221_v43 = vmul.f32 %v2219_v31, %v2205_v49 }
 0xce2   : > { %2233 = vxpose.xlu1.b32.end [2/2] (short) (narrow) %v2221_v43, 16 }
 0xd09   : > { %v2981_v34 = vpop.permute.xlu0 %2980 }
 0xd0a   : > { %v2983_v30 = vunpack.i.h.bf16 %v2981_v34  ;;  %v2982_v1 = vunpack.i.l.bf16 %v2981_v34 }
 0xd0c   : > { %v2230_v4 = vsel %vm970_vm1, %v3074_v38, %v2982_v1  ;;  %v2231_v5 = vsel %vm970_vm1, %v3075_v48, %v2983_v30 }
 0xd0d   : > { %v2911_v6 = vpack.c.bf16 %v2231_v5, %v2230_v4  ;;  %v2099_v29 = vpop.permute.xlu0 %2098 }
 0xd0e   : > { %v2104_v36 = vsel %vm858_vm12, %v2067_v21, %v2099_v29 }
 0xd0f   : > { %2912 = vmatprep.subr.bf16.mxu1 %v2911_v6  ;;  %v2439_v17 = vsub.f32 1.0, %v2104_v36  ;;  %v2437_v58 = vmul.f32 %v3683_v62, %v2104_v36 }
 0xd10   : > { %2914 = vmatpush3.bf16.msra.mxu1 %v2911_v6 }
 0xd11   : > { %2916 = vmatprep.subr.bf16.mxu1 %v2915_v7  ;;  %v2101_v51 = vpop.permute.xlu0 %2100 }
 0xd12   : > { %v2105_v54 = vsel %vm858_vm12, %v2810_v14, %v2101_v51 }
 0xd13   : > { %v2440_v15 = vsub.f32 1.0, %v2105_v54  ;;  %v2438_v47 = vmul.f32 %v3679_v23, %v2105_v54 }
 0xd5e   : > { %v2248_v9 = vpop.trf.xlu1 }
 0xd5f   : > { %2825 = vmatprep.mubr.msk.f32.mxu1 %vm858_vm12, %v2248_v9 }
 0xd62   : > { %v2249_v13 = vpop.trf.xlu1 }
 0xd63   : > { %2826 = vmatmul.mubr.msk.f32.vlgmr.msra.gmra.mrb[16].mxu1 %vm858_vm12, %v2249_v13 }
 0xd64   : > { %2918 = vmatpush3.bf16.msra.mxu1 %v2915_v7 }
 0xd65   : > { %2920 = vmatprep.subr.bf16.mxu1 %v2919_v8 }
 0xd68   : > { %2922 = vmatpush3.bf16.msra.mxu1 %v2919_v8 }
 0xd69   : > { %2836 = vmatprep.subr.msk.mxu1 %vm1101_vm2, %v2117_v22 }
 0xd6c   : > { %2837 = vmatpush3.msk.msra.mxu1 %vm1101_vm2, %v2117_v22 }
 0xe36   : > { %v2827_v33 = vpop.f32.mrb[16].mxu1 }
 0xe37   : > { %v2336_v24 = vpop.f32.mrb[17].mxu1  ;;  %v2346_v27 = vmul.f32 %v2827_v33, %v2219_v31 }
 0xe38   : > { %v2345_v26 = vmul.f32 %v2336_v24, %v3661_v40 }
 0xe3a   : > { %2838 = vmatprep.mubr.msk.f32.mxu1 %vm1094_vm3, %v2345_v26 }
 0xe3b   : > { %2839 = vmatmul.mubr.msk.f32.vlgmr.msra.gmra.mrb[18].mxu1 %vm1094_vm3, %v2346_v27 }
 0xf0e   : > { %v2840_v32 = vpop.f32.mrb[18].mxu1 }
 0xf0f   : > { %v2434_v46 = vadd.f32 %v2840_v32, %v2593_v28  ;;  %v2428_v56 = vpop.f32.mrb[19].mxu1 }
 0xf10   : > { %v2429_v50 = vadd.f32 %v2593_v28, %v2428_v56 }
 0xf11   : > { %3068 = vtanh.f32 %v2434_v46 }
 0xf12   : > { %3070 = vtanh.f32 %v2429_v50 }
 0xf1b   : > { %v3069_v12 = vpop.eup %3068 }
 0xf1c   : > { %v3071_v52 = vpop.eup %3070  ;;  %v2444_v49 = vmul.f32 %v3069_v12, %v2440_v15 }
 0xf1d   : > { %v2443_v37 = vmul.f32 %v3071_v52, %v2439_v17 }
 0xf1e   : > { %v2446_v53 = vadd.f32 %v2444_v49, %v2438_v47 }
 0xf1f   : > { %v2445_v55 = vadd.f32 %v2443_v37, %v2437_v58 }
 0xf20   : > { %2448 = vst.msk [vmem:[%s595_s23 + $0x8] sm:$0xff] %vm1809_vm8, %v2446_v53 }
 0xf21   : > { %2447 = vst.msk [vmem:[%s595_s23] sm:$0xff] %vm1809_vm8, %v2445_v55 }
 0xf22 PF: > { %s28_s27 = sadd.s32 1, %s3082_s27  }
 0xf23   : > { %p25_p4 = scmp.ge.s32.totalorder %s28_s27, 4  }
 0xf25   :  { %27 = sbr.rel (!%p25_p4) target bundleno = 4 (0x4), region = 125 }

</bundles_post_ra>
